<compile_context>
chip_gen: v6e
topology: v6e:2x2x1
jax: 0.10.0
libtpu: 0.0.40
codegen_flags: <defaults>
</compile_context>

<pallas_src>
import functools

import jax
import jax.numpy as jnp
import numpy as np
from jax import lax
from jax.experimental import pallas as pl
from jax.experimental.pallas import tpu as pltpu

EPS = 1e-5
_PAD_SUB = 8      # top/bottom zero-padding rows in the depthwise scratch (tile aligned)
_PAD_LANE = 128   # left/right zero-padding lanes in the depthwise scratch (tile aligned)
_MXU_WIDTH = 256  # block-diagonal 1x1-conv weight width (MXU-native on v6e/v7x; use 128 on v5e)


def _residual_block_kernel(x_ref, bd1_ref, bd3_ref, pv_ref, o_ref, hp_ref, *, C, G):
    """One batch element: full (H, W*C) lane-dense activation slab."""
    H, WC = x_ref.shape
    GC = G * C
    n_grp = WC // GC
    f32 = jnp.float32

    pv = pv_ref[...]                                 # (12, WC) packed per-channel params
    b1w, b2w, b3w = pv[9], pv[10], pv[11]            # BN shifts (conv bias folded, W-tiled)

    # --- zero only the halo bands of the depthwise scratch (aligned, unmasked
    #     stores); the interior is overwritten by the conv1 output store below.
    Hp, Wp = hp_ref.shape
    hp_ref[0:_PAD_SUB, :] = jnp.zeros((_PAD_SUB, Wp), f32)
    hp_ref[_PAD_SUB + H:, :] = jnp.zeros((Hp - _PAD_SUB - H, Wp), f32)
    hp_ref[_PAD_SUB:_PAD_SUB + H, 0:_PAD_LANE] = jnp.zeros((H, _PAD_LANE), f32)
    hp_ref[_PAD_SUB:_PAD_SUB + H, _PAD_LANE + WC:] = jnp.zeros((H, Wp - _PAD_LANE - WC), f32)

    # --- conv1 (1x1) + BN1 + ReLU: block-diagonal (G*C) matmuls on the MXU
    #     (bf16 operands, f32 accumulation), one per lane-aligned column group.
    for j in range(n_grp):
        lo = j * GC
        xj = x_ref[:, lo:lo + GC].astype(jnp.bfloat16)                 # (H, GC)
        hj = jnp.dot(xj, bd1_ref[...], preferred_element_type=f32)     # (H, GC)
        hj = jnp.maximum(hj + b1w[lo:lo + GC], 0.0)
        hp_ref[_PAD_SUB:_PAD_SUB + H, _PAD_LANE + lo:_PAD_LANE + lo + GC] = hj

    # --- conv2 (3x3 depthwise, padding=1) + BN2 + ReLU via 9 shifted slices
    #     of the zero-padded scratch (taps already BN2-scaled and W-tiled).
    acc = None
    for k in range(9):
        dy, dx = divmod(k, 3)
        r0 = _PAD_SUB - 1 + dy
        l0 = _PAD_LANE - C + dx * C
        term = hp_ref[r0:r0 + H, l0:l0 + WC] * pv[k]
        acc = term if acc is None else acc + term
    h2 = jnp.maximum(acc + b2w, 0.0)

    # --- conv3 (1x1) + BN3, residual add, final ReLU. The residual input is
    #     re-read here (point of use) so it is not live across the stencil.
    for j in range(n_grp):
        lo = j * GC
        h2j = h2[:, lo:lo + GC].astype(jnp.bfloat16)
        h3j = jnp.dot(h2j, bd3_ref[...], preferred_element_type=f32)
        o_ref[:, lo:lo + GC] = jnp.maximum(
            h3j + b3w[lo:lo + GC] + x_ref[:, lo:lo + GC], 0.0).astype(o_ref.dtype)


def residual_block1_pallas_nhwc(x_slab, kparams, C):
    """x_slab: (N, H, W*C) float32 lane-dense slab (NHWC flattened over W,C)."""
    N, H, WC = x_slab.shape
    bd1, bd3, pvec, G = kparams
    GC = G * C
    W = WC // C
    assert bd1.shape == (GC, GC) and bd3.shape == (GC, GC)
    assert pvec.shape == (12, WC) and WC % GC == 0

    kernel = functools.partial(_residual_block_kernel, C=C, G=G)
    flops = 4 * N * H * W * C * GC + 2 * 9 * N * H * WC + 6 * N * H * WC
    bytes_accessed = (2 * N * H * WC * 4          # activations in + out
                      + (bd1.size + bd3.size) * 2  # bf16 block-diag weights
                      + pvec.size * 4)

    return pl.pallas_call(
        kernel,
        out_shape=jax.ShapeDtypeStruct((N, H, WC), jnp.float32),
        grid=(N,),   # one batch element per step; parallel -> uses both TCs on v7x
        in_specs=[
            pl.BlockSpec((None, H, WC), lambda b: (b, 0, 0)),
            pl.BlockSpec((GC, GC), lambda b: (0, 0)),   # constant block: not re-DMA'd per step
            pl.BlockSpec((GC, GC), lambda b: (0, 0)),
            pl.BlockSpec((12, WC), lambda b: (0, 0)),
        ],
        out_specs=pl.BlockSpec((None, H, WC), lambda b: (b, 0, 0)),
        scratch_shapes=[
            pltpu.VMEM((H + 2 * _PAD_SUB, WC + 2 * _PAD_LANE), jnp.float32),
        ],
        compiler_params=pltpu.CompilerParams(
            dimension_semantics=("parallel",),
        ),
        cost_estimate=pl.CostEstimate(
            flops=flops, transcendentals=0, bytes_accessed=bytes_accessed),
    )(x_slab, bd1, bd3, pvec)


def residual_block1_pallas(x_nchw, kparams):
    """x_nchw: (N, C, H, W) float32.  kparams: output of fold_params_for_kernel.

    NOTE: the surrounding graph should stay NHWC where possible and call
    residual_block1_pallas_nhwc directly — each transpose below is an extra
    XLA HBM pass over the activations.
    """
    N, C, H, W = x_nchw.shape
    x_slab = jnp.transpose(x_nchw, (0, 2, 3, 1)).reshape(N, H, W * C)
    out = residual_block1_pallas_nhwc(x_slab, kparams, C)
    return jnp.transpose(out.reshape(N, H, W, C), (0, 3, 1, 2))   # back to NCHW


# ---------------------- parameter construction / reference ----------------------

def make_params(key, in_channels=32, n=32):
    ks = jax.random.split(key, 20)
    p = {
        # conv weights / biases (PyTorch layouts)
        "conv1_w": jax.random.normal(ks[0], (n, in_channels, 1, 1)) * 0.1,
        "conv1_b": jax.random.normal(ks[1], (n,)) * 0.1,
        "conv2_w": jax.random.normal(ks[2], (n, 1, 3, 3)) * 0.1,   # depthwise, groups=n
        "conv2_b": jax.random.normal(ks[3], (n,)) * 0.1,
        "conv3_w": jax.random.normal(ks[4], (in_channels, n, 1, 1)) * 0.1,
        "conv3_b": jax.random.normal(ks[5], (in_channels,)) * 0.1,
        # BN params (gamma, beta, running_mean, running_var)
        "bn1_g": jax.random.normal(ks[6], (n,)) * 0.1 + 1.0,
        "bn1_b": jax.random.normal(ks[7], (n,)) * 0.1,
        "bn1_m": jax.random.normal(ks[8], (n,)) * 0.1,
        "bn1_v": jax.random.uniform(ks[9], (n,), minval=0.5, maxval=1.5),
        "bn2_g": jax.random.normal(ks[10], (n,)) * 0.1 + 1.0,
        "bn2_b": jax.random.normal(ks[11], (n,)) * 0.1,
        "bn2_m": jax.random.normal(ks[12], (n,)) * 0.1,
        "bn2_v": jax.random.uniform(ks[13], (n,), minval=0.5, maxval=1.5),
        "bn3_g": jax.random.normal(ks[14], (in_channels,)) * 0.1 + 1.0,
        "bn3_b": jax.random.normal(ks[15], (in_channels,)) * 0.1,
        "bn3_m": jax.random.normal(ks[16], (in_channels,)) * 0.1,
        "bn3_v": jax.random.uniform(ks[17], (in_channels,), minval=0.5, maxval=1.5),
    }
    return {k: v.astype(jnp.float32) for k, v in p.items()}


def fold_params_for_kernel(p, W, mxu_width=_MXU_WIDTH):
    """Fold conv biases + BN (eval mode) into kernel-ready, lane-dense params.

    Returns:
      bd1: (G*C, G*C) bf16 block-diagonal conv1 weight with BN1 scale folded in.
      bd3: (G*C, G*C) bf16 block-diagonal conv3 weight with BN3 scale folded in.
      pvec: (12, W*C) f32 packed rows: 0..8 = 3x3 depthwise taps (BN2 scale
            folded, tiled across W); 9/10/11 = BN1/BN2/BN3 shifts (bias folded,
            tiled across W).
      G: pixel-group size of the block-diagonal weight (G*C ~ MXU width).
    """
    def fold(conv_b, g, beta, m, v):
        scale = g / jnp.sqrt(v + EPS)
        shift = beta + (conv_b - m) * scale
        return scale, shift

    n = p["conv1_w"].shape[0]
    cin = p["conv3_w"].shape[0]
    assert n == cin, "kernel assumes in_channels == n (module defaults)"
    C = cin

    G = max(1, min(W, mxu_width // C))
    while W % G:      # keep column groups exactly covering each row of W pixels
        G -= 1

    s1, b1 = fold(p["conv1_b"], p["bn1_g"], p["bn1_b"], p["bn1_m"], p["bn1_v"])
    s2, b2 = fold(p["conv2_b"], p["bn2_g"], p["bn2_b"], p["bn2_m"], p["bn2_v"])
    s3, b3 = fold(p["conv3_b"], p["bn3_g"], p["bn3_b"], p["bn3_m"], p["bn3_v"])

    w1 = p["conv1_w"].reshape(n, -1).T * s1[None, :]      # (C_in, n), BN1 scale folded
    w3 = p["conv3_w"].reshape(cin, -1).T * s3[None, :]    # (n, C_in), BN3 scale folded
    eye = jnp.eye(G, dtype=jnp.float32)
    bd1 = jnp.kron(eye, w1).astype(jnp.bfloat16)          # block-diagonal over G pixels
    bd3 = jnp.kron(eye, w3).astype(jnp.bfloat16)

    wd = p["conv2_w"].reshape(n, 3, 3)                    # depthwise taps (C, 3, 3)
    rows = [jnp.tile(wd[:, dy, dx] * s2, W) for dy in range(3) for dx in range(3)]
    rows += [jnp.tile(b1, W), jnp.tile(b2, W), jnp.tile(b3, W)]
    pvec = jnp.stack(rows).astype(jnp.float32)            # (12, W*C)
    return bd1, bd3, pvec, G


def reference_forward(x, p):
    """Pure-JAX NCHW reference mirroring the PyTorch module (BN in eval mode)."""
    def conv(x, w, b, padding=0, groups=1):
        y = lax.conv_general_dilated(
            x, w, (1, 1), [(padding, padding)] * 2,
            dimension_numbers=("NCHW", "OIHW", "NCHW"),
            feature_group_count=groups, precision=lax.Precision.HIGHEST)
        return y + b.reshape(1, -1, 1, 1)

    def bn(x, g, beta, m, v):
        rs = lambda a: a.reshape(1, -1, 1, 1)
        return (x - rs(m)) / jnp.sqrt(rs(v) + EPS) * rs(g) + rs(beta)

    h = jnp.maximum(bn(conv(x, p["conv1_w"], p["conv1_b"]),
                       p["bn1_g"], p["bn1_b"], p["bn1_m"], p["bn1_v"]), 0.0)
    h = jnp.maximum(bn(conv(h, p["conv2_w"], p["conv2_b"], padding=1, groups=h.shape[1]),
                       p["bn2_g"], p["bn2_b"], p["bn2_m"], p["bn2_v"]), 0.0)
    h = bn(conv(h, p["conv3_w"], p["conv3_b"]),
           p["bn3_g"], p["bn3_b"], p["bn3_m"], p["bn3_v"])
    return jnp.maximum(h + x, 0.0)


if __name__ == "__main__":
    key = jax.random.PRNGKey(0)
    kx, kp = jax.random.split(key)

    N, C, H, W = 2, 32, 16, 16          # in_channels = n = g = 32 (module defaults)
    x = jax.random.normal(kx, (N, C, H, W), dtype=jnp.float32)

    params = make_params(kp, in_channels=C, n=C)
    kparams = fold_params_for_kernel(params, W)

    out = jax.block_until_ready(residual_block1_pallas(x, kparams))
    ref = jax.block_until_ready(reference_forward(x, params))

    # bf16 MXU operands (fp32 accumulation) -> slightly looser tolerance than pure fp32.
    np.testing.assert_allclose(np.asarray(out), np.asarray(ref), rtol=3e-2, atol=3e-2)

    print("KERNEL_OK")
</pallas_src>

<mosaic_0001>
module attributes {stable_mosaic.version = 11 : i64} {
  func.func @_residual_block_kernel(%arg0: i32, %arg1: memref<1x16x512xf32, #tpu.memory_space<vmem>>, %arg2: memref<256x256xbf16, #tpu.memory_space<vmem>>, %arg3: memref<256x256xbf16, #tpu.memory_space<vmem>>, %arg4: memref<12x512xf32, #tpu.memory_space<vmem>>, %arg5: memref<1x16x512xf32, #tpu.memory_space<vmem>>, %arg6: memref<32x768xf32, #tpu.memory_space<vmem>>) attributes {dimension_semantics = [#tpu.dimension_semantics<parallel>], iteration_bounds = array<i64: 2>, scalar_prefetch = 0 : i64, scratch_operands = 1 : i64, tpu.core_type = #tpu.core_type<tc>, window_params = [{transform_indices = @transform_0, window_bounds = array<i64: 1, 16, 512>}, {pipeline_mode = #tpu.pipeline_mode<synchronous>, transform_indices = @transform_1, window_bounds = array<i64: 256, 256>}, {pipeline_mode = #tpu.pipeline_mode<synchronous>, transform_indices = @transform_2, window_bounds = array<i64: 256, 256>}, {pipeline_mode = #tpu.pipeline_mode<synchronous>, transform_indices = @transform_3, window_bounds = array<i64: 12, 512>}, {transform_indices = @transform_4, window_bounds = array<i64: 1, 16, 512>}]} {
    %c0 = arith.constant 0 : index
    %c0_0 = arith.constant 0 : index
    %0 = vector.load %arg4[%c0, %c0_0] : memref<12x512xf32, #tpu.memory_space<vmem>>, vector<12x512xf32>
    %1 = vector.extract_strided_slice %0 {offsets = [9, 0], sizes = [1, 512], strides = [1, 1]} : vector<12x512xf32> to vector<1x512xf32>
    %2 = vector.shape_cast %1 : vector<1x512xf32> to vector<512xf32>
    %3 = vector.extract_strided_slice %0 {offsets = [10, 0], sizes = [1, 512], strides = [1, 1]} : vector<12x512xf32> to vector<1x512xf32>
    %4 = vector.shape_cast %3 : vector<1x512xf32> to vector<512xf32>
    %5 = vector.extract_strided_slice %0 {offsets = [11, 0], sizes = [1, 512], strides = [1, 1]} : vector<12x512xf32> to vector<1x512xf32>
    %6 = vector.shape_cast %5 : vector<1x512xf32> to vector<512xf32>
    %cst = arith.constant 0.000000e+00 : f32
    %7 = vector.broadcast %cst : f32 to vector<8x768xf32>
    %c0_1 = arith.constant 0 : index
    %c0_2 = arith.constant 0 : index
    %8 = vector.load %arg6[%c0_1, %c0_2] : memref<32x768xf32, #tpu.memory_space<vmem>>, vector<8x768xf32>
    tpu.vector_store %arg6[%c0_1, %c0_2], %7 {strides = array<i32>} : memref<32x768xf32, #tpu.memory_space<vmem>>, vector<8x768xf32>,
    %cst_3 = arith.constant 0.000000e+00 : f32
    %9 = vector.broadcast %cst_3 : f32 to vector<8x768xf32>
    %c24 = arith.constant 24 : index
    %c0_4 = arith.constant 0 : index
    %10 = vector.load %arg6[%c24, %c0_4] : memref<32x768xf32, #tpu.memory_space<vmem>>, vector<8x768xf32>
    tpu.vector_store %arg6[%c24, %c0_4], %9 {strides = array<i32>} : memref<32x768xf32, #tpu.memory_space<vmem>>, vector<8x768xf32>,
    %cst_5 = arith.constant 0.000000e+00 : f32
    %11 = vector.broadcast %cst_5 : f32 to vector<16x128xf32>
    %c8 = arith.constant 8 : index
    %c0_6 = arith.constant 0 : index
    %12 = vector.load %arg6[%c8, %c0_6] : memref<32x768xf32, #tpu.memory_space<vmem>>, vector<16x128xf32>
    tpu.vector_store %arg6[%c8, %c0_6], %11 {strides = array<i32>} : memref<32x768xf32, #tpu.memory_space<vmem>>, vector<16x128xf32>,
    %cst_7 = arith.constant 0.000000e+00 : f32
    %13 = vector.broadcast %cst_7 : f32 to vector<16x128xf32>
    %c8_8 = arith.constant 8 : index
    %c640 = arith.constant 640 : index
    %14 = vector.load %arg6[%c8_8, %c640] : memref<32x768xf32, #tpu.memory_space<vmem>>, vector<16x128xf32>
    tpu.vector_store %arg6[%c8_8, %c640], %13 {strides = array<i32>} : memref<32x768xf32, #tpu.memory_space<vmem>>, vector<16x128xf32>,
    %c0_9 = arith.constant 0 : index
    %c0_10 = arith.constant 0 : index
    %c0_11 = arith.constant 0 : index
    %15 = vector.load %arg1[%c0_9, %c0_10, %c0_11] : memref<1x16x512xf32, #tpu.memory_space<vmem>>, vector<1x16x256xf32>
    %16 = vector.shape_cast %15 : vector<1x16x256xf32> to vector<16x256xf32>
    %17 = arith.truncf %16 : vector<16x256xf32> to vector<16x256xbf16>
    %c0_12 = arith.constant 0 : index
    %c0_13 = arith.constant 0 : index
    %18 = vector.load %arg2[%c0_12, %c0_13] : memref<256x256xbf16, #tpu.memory_space<vmem>>, vector<256x256xbf16>
    %cst_14 = arith.constant dense<0.000000e+00> : vector<16x256xf32>
    %19 = tpu.matmul %17, %18, %cst_14 {dimension_numbers = #tpu.dot_dimension_numbers<[1], [0], [0], [1], [0, 0, 1, 1], [], []>} : vector<16x256xbf16>, vector<256x256xbf16>, vector<16x256xf32> -> vector<16x256xf32>
    %20 = vector.extract_strided_slice %2 {offsets = [0], sizes = [256], strides = [1]} : vector<512xf32> to vector<256xf32>
    %21 = vector.shape_cast %20 : vector<256xf32> to vector<1x256xf32>
    %22 = vector.broadcast %21 : vector<1x256xf32> to vector<16x256xf32>
    %23 = arith.addf %19, %22 : vector<16x256xf32>
    %cst_15 = arith.constant 0.000000e+00 : f32
    %24 = vector.broadcast %cst_15 : f32 to vector<16x256xf32>
    %25 = arith.maximumf %23, %24 : vector<16x256xf32>
    %c8_16 = arith.constant 8 : index
    %c128 = arith.constant 128 : index
    %26 = vector.load %arg6[%c8_16, %c128] : memref<32x768xf32, #tpu.memory_space<vmem>>, vector<16x256xf32>
    tpu.vector_store %arg6[%c8_16, %c128], %25 {strides = array<i32>} : memref<32x768xf32, #tpu.memory_space<vmem>>, vector<16x256xf32>,
    %c0_17 = arith.constant 0 : index
    %c0_18 = arith.constant 0 : index
    %c256 = arith.constant 256 : index
    %27 = vector.load %arg1[%c0_17, %c0_18, %c256] : memref<1x16x512xf32, #tpu.memory_space<vmem>>, vector<1x16x256xf32>
    %28 = vector.shape_cast %27 : vector<1x16x256xf32> to vector<16x256xf32>
    %29 = arith.truncf %28 : vector<16x256xf32> to vector<16x256xbf16>
    %c0_19 = arith.constant 0 : index
    %c0_20 = arith.constant 0 : index
    %30 = vector.load %arg2[%c0_19, %c0_20] : memref<256x256xbf16, #tpu.memory_space<vmem>>, vector<256x256xbf16>
    %cst_21 = arith.constant dense<0.000000e+00> : vector<16x256xf32>
    %31 = tpu.matmul %29, %30, %cst_21 {dimension_numbers = #tpu.dot_dimension_numbers<[1], [0], [0], [1], [0, 0, 1, 1], [], []>} : vector<16x256xbf16>, vector<256x256xbf16>, vector<16x256xf32> -> vector<16x256xf32>
    %32 = vector.extract_strided_slice %2 {offsets = [256], sizes = [256], strides = [1]} : vector<512xf32> to vector<256xf32>
    %33 = vector.shape_cast %32 : vector<256xf32> to vector<1x256xf32>
    %34 = vector.broadcast %33 : vector<1x256xf32> to vector<16x256xf32>
    %35 = arith.addf %31, %34 : vector<16x256xf32>
    %cst_22 = arith.constant 0.000000e+00 : f32
    %36 = vector.broadcast %cst_22 : f32 to vector<16x256xf32>
    %37 = arith.maximumf %35, %36 : vector<16x256xf32>
    %c8_23 = arith.constant 8 : index
    %c384 = arith.constant 384 : index
    %38 = vector.load %arg6[%c8_23, %c384] : memref<32x768xf32, #tpu.memory_space<vmem>>, vector<16x256xf32>
    tpu.vector_store %arg6[%c8_23, %c384], %37 {strides = array<i32>} : memref<32x768xf32, #tpu.memory_space<vmem>>, vector<16x256xf32>,
    %c7 = arith.constant 7 : index
    %c96 = arith.constant 96 : index
    %39 = vector.load %arg6[%c7, %c96] : memref<32x768xf32, #tpu.memory_space<vmem>>, vector<16x512xf32>
    %40 = vector.extract_strided_slice %0 {offsets = [0, 0], sizes = [1, 512], strides = [1, 1]} : vector<12x512xf32> to vector<1x512xf32>
    %41 = vector.shape_cast %40 : vector<1x512xf32> to vector<512xf32>
    %42 = vector.shape_cast %41 : vector<512xf32> to vector<1x512xf32>
    %43 = vector.broadcast %42 : vector<1x512xf32> to vector<16x512xf32>
    %44 = arith.mulf %39, %43 : vector<16x512xf32>
    %c7_24 = arith.constant 7 : index
    %c128_25 = arith.constant 128 : index
    %45 = vector.load %arg6[%c7_24, %c128_25] : memref<32x768xf32, #tpu.memory_space<vmem>>, vector<16x512xf32>
    %46 = vector.extract_strided_slice %0 {offsets = [1, 0], sizes = [1, 512], strides = [1, 1]} : vector<12x512xf32> to vector<1x512xf32>
    %47 = vector.shape_cast %46 : vector<1x512xf32> to vector<512xf32>
    %48 = vector.shape_cast %47 : vector<512xf32> to vector<1x512xf32>
    %49 = vector.broadcast %48 : vector<1x512xf32> to vector<16x512xf32>
    %50 = arith.mulf %45, %49 : vector<16x512xf32>
    %51 = arith.addf %44, %50 : vector<16x512xf32>
    %c7_26 = arith.constant 7 : index
    %c160 = arith.constant 160 : index
    %52 = vector.load %arg6[%c7_26, %c160] : memref<32x768xf32, #tpu.memory_space<vmem>>, vector<16x512xf32>
    %53 = vector.extract_strided_slice %0 {offsets = [2, 0], sizes = [1, 512], strides = [1, 1]} : vector<12x512xf32> to vector<1x512xf32>
    %54 = vector.shape_cast %53 : vector<1x512xf32> to vector<512xf32>
    %55 = vector.shape_cast %54 : vector<512xf32> to vector<1x512xf32>
    %56 = vector.broadcast %55 : vector<1x512xf32> to vector<16x512xf32>
    %57 = arith.mulf %52, %56 : vector<16x512xf32>
    %58 = arith.addf %51, %57 : vector<16x512xf32>
    %c8_27 = arith.constant 8 : index
    %c96_28 = arith.constant 96 : index
    %59 = vector.load %arg6[%c8_27, %c96_28] : memref<32x768xf32, #tpu.memory_space<vmem>>, vector<16x512xf32>
    %60 = vector.extract_strided_slice %0 {offsets = [3, 0], sizes = [1, 512], strides = [1, 1]} : vector<12x512xf32> to vector<1x512xf32>
    %61 = vector.shape_cast %60 : vector<1x512xf32> to vector<512xf32>
    %62 = vector.shape_cast %61 : vector<512xf32> to vector<1x512xf32>
    %63 = vector.broadcast %62 : vector<1x512xf32> to vector<16x512xf32>
    %64 = arith.mulf %59, %63 : vector<16x512xf32>
    %65 = arith.addf %58, %64 : vector<16x512xf32>
    %c8_29 = arith.constant 8 : index
    %c128_30 = arith.constant 128 : index
    %66 = vector.load %arg6[%c8_29, %c128_30] : memref<32x768xf32, #tpu.memory_space<vmem>>, vector<16x512xf32>
    %67 = vector.extract_strided_slice %0 {offsets = [4, 0], sizes = [1, 512], strides = [1, 1]} : vector<12x512xf32> to vector<1x512xf32>
    %68 = vector.shape_cast %67 : vector<1x512xf32> to vector<512xf32>
    %69 = vector.shape_cast %68 : vector<512xf32> to vector<1x512xf32>
    %70 = vector.broadcast %69 : vector<1x512xf32> to vector<16x512xf32>
    %71 = arith.mulf %66, %70 : vector<16x512xf32>
    %72 = arith.addf %65, %71 : vector<16x512xf32>
    %c8_31 = arith.constant 8 : index
    %c160_32 = arith.constant 160 : index
    %73 = vector.load %arg6[%c8_31, %c160_32] : memref<32x768xf32, #tpu.memory_space<vmem>>, vector<16x512xf32>
    %74 = vector.extract_strided_slice %0 {offsets = [5, 0], sizes = [1, 512], strides = [1, 1]} : vector<12x512xf32> to vector<1x512xf32>
    %75 = vector.shape_cast %74 : vector<1x512xf32> to vector<512xf32>
    %76 = vector.shape_cast %75 : vector<512xf32> to vector<1x512xf32>
    %77 = vector.broadcast %76 : vector<1x512xf32> to vector<16x512xf32>
    %78 = arith.mulf %73, %77 : vector<16x512xf32>
    %79 = arith.addf %72, %78 : vector<16x512xf32>
    %c9 = arith.constant 9 : index
    %c96_33 = arith.constant 96 : index
    %80 = vector.load %arg6[%c9, %c96_33] : memref<32x768xf32, #tpu.memory_space<vmem>>, vector<16x512xf32>
    %81 = vector.extract_strided_slice %0 {offsets = [6, 0], sizes = [1, 512], strides = [1, 1]} : vector<12x512xf32> to vector<1x512xf32>
    %82 = vector.shape_cast %81 : vector<1x512xf32> to vector<512xf32>
    %83 = vector.shape_cast %82 : vector<512xf32> to vector<1x512xf32>
    %84 = vector.broadcast %83 : vector<1x512xf32> to vector<16x512xf32>
    %85 = arith.mulf %80, %84 : vector<16x512xf32>
    %86 = arith.addf %79, %85 : vector<16x512xf32>
    %c9_34 = arith.constant 9 : index
    %c128_35 = arith.constant 128 : index
    %87 = vector.load %arg6[%c9_34, %c128_35] : memref<32x768xf32, #tpu.memory_space<vmem>>, vector<16x512xf32>
    %88 = vector.extract_strided_slice %0 {offsets = [7, 0], sizes = [1, 512], strides = [1, 1]} : vector<12x512xf32> to vector<1x512xf32>
    %89 = vector.shape_cast %88 : vector<1x512xf32> to vector<512xf32>
    %90 = vector.shape_cast %89 : vector<512xf32> to vector<1x512xf32>
    %91 = vector.broadcast %90 : vector<1x512xf32> to vector<16x512xf32>
    %92 = arith.mulf %87, %91 : vector<16x512xf32>
    %93 = arith.addf %86, %92 : vector<16x512xf32>
    %c9_36 = arith.constant 9 : index
    %c160_37 = arith.constant 160 : index
    %94 = vector.load %arg6[%c9_36, %c160_37] : memref<32x768xf32, #tpu.memory_space<vmem>>, vector<16x512xf32>
    %95 = vector.extract_strided_slice %0 {offsets = [8, 0], sizes = [1, 512], strides = [1, 1]} : vector<12x512xf32> to vector<1x512xf32>
    %96 = vector.shape_cast %95 : vector<1x512xf32> to vector<512xf32>
    %97 = vector.shape_cast %96 : vector<512xf32> to vector<1x512xf32>
    %98 = vector.broadcast %97 : vector<1x512xf32> to vector<16x512xf32>
    %99 = arith.mulf %94, %98 : vector<16x512xf32>
    %100 = arith.addf %93, %99 : vector<16x512xf32>
    %101 = vector.shape_cast %4 : vector<512xf32> to vector<1x512xf32>
    %102 = vector.broadcast %101 : vector<1x512xf32> to vector<16x512xf32>
    %103 = arith.addf %100, %102 : vector<16x512xf32>
    %cst_38 = arith.constant 0.000000e+00 : f32
    %104 = vector.broadcast %cst_38 : f32 to vector<16x512xf32>
    %105 = arith.maximumf %103, %104 : vector<16x512xf32>
    %106 = vector.extract_strided_slice %105 {offsets = [0, 0], sizes = [16, 256], strides = [1, 1]} : vector<16x512xf32> to vector<16x256xf32>
    %107 = arith.truncf %106 : vector<16x256xf32> to vector<16x256xbf16>
    %c0_39 = arith.constant 0 : index
    %c0_40 = arith.constant 0 : index
    %108 = vector.load %arg3[%c0_39, %c0_40] : memref<256x256xbf16, #tpu.memory_space<vmem>>, vector<256x256xbf16>
    %cst_41 = arith.constant dense<0.000000e+00> : vector<16x256xf32>
    %109 = tpu.matmul %107, %108, %cst_41 {dimension_numbers = #tpu.dot_dimension_numbers<[1], [0], [0], [1], [0, 0, 1, 1], [], []>} : vector<16x256xbf16>, vector<256x256xbf16>, vector<16x256xf32> -> vector<16x256xf32>
    %110 = vector.extract_strided_slice %6 {offsets = [0], sizes = [256], strides = [1]} : vector<512xf32> to vector<256xf32>
    %111 = vector.shape_cast %110 : vector<256xf32> to vector<1x256xf32>
    %112 = vector.broadcast %111 : vector<1x256xf32> to vector<16x256xf32>
    %113 = arith.addf %109, %112 : vector<16x256xf32>
    %c0_42 = arith.constant 0 : index
    %c0_43 = arith.constant 0 : index
    %c0_44 = arith.constant 0 : index
    %114 = vector.load %arg1[%c0_42, %c0_43, %c0_44] : memref<1x16x512xf32, #tpu.memory_space<vmem>>, vector<1x16x256xf32>
    %115 = vector.shape_cast %114 : vector<1x16x256xf32> to vector<16x256xf32>
    %116 = arith.addf %113, %115 : vector<16x256xf32>
    %cst_45 = arith.constant 0.000000e+00 : f32
    %117 = vector.broadcast %cst_45 : f32 to vector<16x256xf32>
    %118 = arith.maximumf %116, %117 : vector<16x256xf32>
    %c0_46 = arith.constant 0 : index
    %c0_47 = arith.constant 0 : index
    %c0_48 = arith.constant 0 : index
    %119 = vector.load %arg5[%c0_46, %c0_47, %c0_48] : memref<1x16x512xf32, #tpu.memory_space<vmem>>, vector<1x16x256xf32>
    %120 = vector.shape_cast %119 : vector<1x16x256xf32> to vector<16x256xf32>
    %121 = vector.shape_cast %118 : vector<16x256xf32> to vector<1x16x256xf32>
    tpu.vector_store %arg5[%c0_46, %c0_47, %c0_48], %121 {strides = array<i32>} : memref<1x16x512xf32, #tpu.memory_space<vmem>>, vector<1x16x256xf32>,
    %122 = vector.extract_strided_slice %105 {offsets = [0, 256], sizes = [16, 256], strides = [1, 1]} : vector<16x512xf32> to vector<16x256xf32>
    %123 = arith.truncf %122 : vector<16x256xf32> to vector<16x256xbf16>
    %c0_49 = arith.constant 0 : index
    %c0_50 = arith.constant 0 : index
    %124 = vector.load %arg3[%c0_49, %c0_50] : memref<256x256xbf16, #tpu.memory_space<vmem>>, vector<256x256xbf16>
    %cst_51 = arith.constant dense<0.000000e+00> : vector<16x256xf32>
    %125 = tpu.matmul %123, %124, %cst_51 {dimension_numbers = #tpu.dot_dimension_numbers<[1], [0], [0], [1], [0, 0, 1, 1], [], []>} : vector<16x256xbf16>, vector<256x256xbf16>, vector<16x256xf32> -> vector<16x256xf32>
    %126 = vector.extract_strided_slice %6 {offsets = [256], sizes = [256], strides = [1]} : vector<512xf32> to vector<256xf32>
    %127 = vector.shape_cast %126 : vector<256xf32> to vector<1x256xf32>
    %128 = vector.broadcast %127 : vector<1x256xf32> to vector<16x256xf32>
    %129 = arith.addf %125, %128 : vector<16x256xf32>
    %c0_52 = arith.constant 0 : index
    %c0_53 = arith.constant 0 : index
    %c256_54 = arith.constant 256 : index
    %130 = vector.load %arg1[%c0_52, %c0_53, %c256_54] : memref<1x16x512xf32, #tpu.memory_space<vmem>>, vector<1x16x256xf32>
    %131 = vector.shape_cast %130 : vector<1x16x256xf32> to vector<16x256xf32>
    %132 = arith.addf %129, %131 : vector<16x256xf32>
    %cst_55 = arith.constant 0.000000e+00 : f32
    %133 = vector.broadcast %cst_55 : f32 to vector<16x256xf32>
    %134 = arith.maximumf %132, %133 : vector<16x256xf32>
    %c0_56 = arith.constant 0 : index
    %c0_57 = arith.constant 0 : index
    %c256_58 = arith.constant 256 : index
    %135 = vector.load %arg5[%c0_56, %c0_57, %c256_58] : memref<1x16x512xf32, #tpu.memory_space<vmem>>, vector<1x16x256xf32>
    %136 = vector.shape_cast %135 : vector<1x16x256xf32> to vector<16x256xf32>
    %137 = vector.shape_cast %134 : vector<16x256xf32> to vector<1x16x256xf32>
    tpu.vector_store %arg5[%c0_56, %c0_57, %c256_58], %137 {strides = array<i32>} : memref<1x16x512xf32, #tpu.memory_space<vmem>>, vector<1x16x256xf32>,
    return
  }
  func.func @transform_0(%arg0: i32) -> (i32, i32, i32) {
    %c0_i32 = arith.constant 0 : i32
    %c0_i32_0 = arith.constant 0 : i32
    %c0_i32_1 = arith.constant 0 : i32
    return %arg0, %c0_i32, %c0_i32_0 : i32, i32, i32
  }
  func.func @transform_1(%arg0: i32) -> (i32, i32) {
    %c0_i32 = arith.constant 0 : i32
    %c0_i32_0 = arith.constant 0 : i32
    %c0_i32_1 = arith.constant 0 : i32
    return %c0_i32, %c0_i32_0 : i32, i32
  }
  func.func @transform_2(%arg0: i32) -> (i32, i32) {
    %c0_i32 = arith.constant 0 : i32
    %c0_i32_0 = arith.constant 0 : i32
    %c0_i32_1 = arith.constant 0 : i32
    return %c0_i32, %c0_i32_0 : i32, i32
  }
  func.func @transform_3(%arg0: i32) -> (i32, i32) {
    %c0_i32 = arith.constant 0 : i32
    %c0_i32_0 = arith.constant 0 : i32
    %c0_i32_1 = arith.constant 0 : i32
    return %c0_i32, %c0_i32_0 : i32, i32
  }
  func.func @transform_4(%arg0: i32) -> (i32, i32, i32) {
    %c0_i32 = arith.constant 0 : i32
    %c0_i32_0 = arith.constant 0 : i32
    %c0_i32_1 = arith.constant 0 : i32
    return %arg0, %c0_i32, %c0_i32_0 : i32, i32, i32
  }
}

</mosaic_0001>

<bundles_post_ra>
// kernel: tpu_custom_call.1
= control target key start
LH: loop header
LB: loop body
LE: loop exit
PB: predicated region body
PF: predicated region fallthrough
CT: control target
= control target key end

     0   :  { %9 = vsyncpa [#allocation4], 0  ;;  %s4706_s0 = inlined_call_operand.hbm [shape: f32[2,16,512], index: 0, kind: input, shape index: {}]   ;;  %s4707_s1 = inlined_call_operand.hbm [shape: bf16[256,256], index: 1, kind: input, shape index: {}]   ;;  %s4708_s2 = inlined_call_operand.hbm [shape: bf16[256,256], index: 2, kind: input, shape index: {}]   ;;  %s4709_s3 = inlined_call_operand.hbm [shape: f32[12,512], index: 3, kind: input, shape index: {}]   ;;  %s4710_s4 = inlined_call_operand.hbm [shape: f32[2,16,512], index: 4, kind: output, shape index: {}]  }
   0x1   :  { %11 = vsyncpa [#allocation4 + $0x1], 0 }
   0x2   :  { %12 = vsyncpa [#allocation7], 0 }
   0x3   :  { %13 = vsyncpa [#allocation10], 0 }
   0x4   :  { %14 = vsyncpa [#allocation5], 0 }
   0x5   :  { %16 = vsyncpa [#allocation5 + $0x1], 0  ;;  %s3273_s15 = smov 0   ;;  %s3275_s16 = smov 0  }
   0x6   :  { %s3277_s17 = smov 0   ;;  %s3279_s18 = smov 0  }
   0x7 LB: > { %s3294_s19 = sadd.s32 4294967295, %s3232_s18   ;;  %s2717_s20 = sadd.s32 4294967294, %s3232_s18   ;;  %s3232_s18 = sphi %s3279_s18, %s4962_s18   ;;  %s3228_s17 = sphi %s3277_s17, %s4961_s17   ;;  %s3224_s16 = sphi %s3275_s16, %s4960_s16   ;;  %s3220_s15 = sphi %s3273_s15, %s4959_s15  }
   0x8   : > { %p42_p0 = scmp.ne.s32.totalorder %s3224_s16, %s3220_s15  ;;  %p4711_p1 = scmp.eq.s32.totalorder %s3294_s19, 0 }
   0x9   : > { %p135_p3 = scmp.eq.s32.totalorder %s2717_s20, 1  ;;  %p2718_p5 = scmp.ge.s32.totalorder %s3232_s18, 1 }
   0xa   : > { %p3303_p4 = por %p4711_p1, %p42_p0  ;;  %p142_p7 = scmp.lt.s32.totalorder %s3232_s18, 3 }
   0xb   : > { %p3308_p6 = por %p135_p3, %p42_p0  ;;  %s3234_s24 = smov [#allocation6]  }
   0xc   : > { %s4779_s21 = scalar_select %p3303_p4, 1, 0 }
   0xd   : > { %s4780_s22 = scalar_select %p3308_p6, 1, 0 }
   0xe   : > { %p3313_p8 = pnand %p2718_p5, %p142_p7  ;;  %s154_s25 = sshll.u32 %s3234_s24, 4  ;;  %s155_s25 = int_to_ptr.vmem [resolvable:$true] %s154_s25 }
   0xf   : > { %s3235_s27 = smov [#allocation8]   ;;  %s3236_s29 = smov [#allocation9]  }
  0x10   : > { %s4781_s23 = scalar_select %p3313_p8, 1, 0 }
  0x11   : > { %p2883_p9 = pneg %p3313_p8  ;;  %s167_s28 = sshll.u32 %s3235_s27, 4  ;;  %s168_s28 = int_to_ptr.vmem [resolvable:$true] %s167_s28 }
  0x12   : > { %s180_s30 = sshll.u32 %s3236_s29, 4  ;;  %s3065_s5 = scalar_lea.vmem %s155_s25, 4096  ;;  %s181_s30 = int_to_ptr.vmem [resolvable:$true] %s180_s30 }
  0x13   : > { %p3322_p11 = pnand %p2883_p9, %p4711_p1  ;;  %p3066_p13 = scmp.ne.s32.totalorder %s155_s25, %s3065_s5 }
  0x14   : > { %p3073_p5 = scmp.lt.s32.totalorder %s155_s25, %s155_s25  ;;  %p3074_p7 = scmp.lt.s32.totalorder %s3065_s5, %s3065_s5 }
  0x15   : > { %p3056_p12 = pneg %p3322_p11 }
  0x16   : > { %p3075_p9 = por %p3074_p7, %p3073_p5 }
  0x17   : > { %p3068_p0 = pnand %p3066_p13, %p3056_p12 }
  0x19   : > { %p3069_p3 = pneg %p3068_p0 }
  0x1b   : > { %p3076_p10 = pnand %p3075_p9, %p3069_p3 }
  0x1d   : > { %3079 = shalt.err (!%p3076_p10)
}
  0x1e   : > { %s3237_s6 = smov 128   ;;  %s3238_s7 = smov 8  }
  0x1f   : > { %2886 = dma.hbm_to_vmem [thread:$0]  (!%p3322_p11), %s4707_s1, 4096, %s155_s25, [#allocation7], %s3237_s6, %s3237_s6, %s3238_s7  }
  0x20   : > { %s3091_s10 = scalar_lea.vmem %s168_s28, 4096  ;;  %p3099_p2 = scmp.lt.s32.totalorder %s168_s28, %s168_s28 }
  0x21   : > { %p3092_p1 = scmp.ne.s32.totalorder %s168_s28, %s3091_s10  ;;  %p3100_p6 = scmp.lt.s32.totalorder %s3091_s10, %s3091_s10 }
  0x23   : > { %p3094_p13 = pnand %p3092_p1, %p3056_p12  ;;  %p3101_p5 = por %p3100_p6, %p3099_p2 }
  0x25   : > { %p3095_p0 = pneg %p3094_p13 }
  0x27   : > { %p3102_p3 = pnand %p3101_p5, %p3095_p0 }
  0x29   : > { %3105 = shalt.err (!%p3102_p3)
}
  0x2a   : > { %2889 = dma.hbm_to_vmem [thread:$0]  (!%p3322_p11), %s4708_s2, 4096, %s168_s28, [#allocation7], %s3237_s6, %s3237_s6, %s3238_s7  }
  0x2b   : > { %s3117_s13 = scalar_lea.vmem %s181_s30, 1024  ;;  %p3125_p9 = scmp.lt.s32.totalorder %s181_s30, %s181_s30 }
  0x2c   : > { %p3118_p10 = scmp.ne.s32.totalorder %s181_s30, %s3117_s13  ;;  %p3126_p13 = scmp.lt.s32.totalorder %s3117_s13, %s3117_s13 }
  0x2e   : > { %p3120_p7 = pnand %p3118_p10, %p3056_p12  ;;  %p3127_p4 = por %p3126_p13, %p3125_p9 }
  0x30   : > { %p3121_p1 = pneg %p3120_p7 }
  0x32   : > { %p3128_p2 = pnand %p3127_p4, %p3121_p1 }
  0x34   : > { %3131 = shalt.err (!%p3128_p2)
}
  0x35   : > { %s3239_s14 = smov 512   ;;  %s3240_s20 = smov 32  }
  0x36   : > { %2892 = dma.hbm_to_vmem [thread:$0]  (!%p3322_p11), %s4709_s3, 1024, %s181_s30, [#allocation10], %s3239_s14, %s3239_s14, %s3240_s20  }
  0x37   : > { %s3356_s27 = sadd.s32 1, %s3232_s18   ;;  %s29_s29 = sadd.s32 1, %s3228_s17 }
  0x38   : > { %s26_s28 = ssub.s32 %s3232_s18, %s3356_s27  ;;  %p36_p6 = scmp.ne.s32.totalorder %s3228_s17, %s3224_s16 }
  0x39   : > { %p27_p4 = scmp.eq.s32.totalorder %s26_s28, 0  ;;  %p37_p12 = scmp.eq.s32.totalorder %s3232_s18, 0 }
  0x3a   : > { %p2904_p0 = scmp.lt.s32.totalorder %s3232_s18, 2  ;;  %p4783_p3 = scmp.eq.s32.totalorder %s3294_s19, 1 }
  0x3b   : > { %s3366_s5 = scalar_select %p27_p4, %s3228_s17, %s29_s29  }
  0x3c   : > { %p38_p5 = por %p37_p12, %p36_p6  ;;  %p3370_p10 = por %p4783_p3, %p36_p6 }
  0x3d   : > { %s194_s6 = sand.u32 1, %s3228_s17   ;;  %s2865_s7 = sshll.u32 %s3232_s18, 10 }
  0x3e   : > { %s4784_s26 = scalar_select %p3370_p10, 1, 0 }
  0x3f   : > { %s2723_s30 = sshll.u32 %s194_s6, 6  ;;  %s3379_s10 = scalar_lea.hbm %s4706_s0, %s2865_s7 }
  0x40   : > { %s198_s11 = scalar_lea.vmem [#allocation3], %s2723_s30  ;;  %p3381_p11 = pnand %p2904_p0, %p38_p5 }
  0x41   : > { %s205_s12 = sshll.u32 %s198_s11, 4  ;;  %s3387_s24 = scalar_lea.sflag [#allocation4], %s194_s6  ;;  %s3385_s12 = int_to_ptr.vmem [resolvable:$true] %s205_s12 }
  0x42   : > { %s3132_s25 = scalar_lea.hbm %s3379_s10, 1024  ;;  %p3134_p1 = pneg %p3381_p11 }
  0x43   : > { %p3133_p7 = scmp.ne.s32.totalorder %s3379_s10, %s3132_s25  ;;  %s3137_s7 = scalar_lea.hbm %s4706_s0, 2048 }
  0x44   : > { %p3138_p2 = scmp.lt.s32.totalorder %s3379_s10, %s4706_s0  ;;  %p3139_p4 = scmp.lt.s32.totalorder %s3137_s7, %s3132_s25 }
  0x45   : > { %p3135_p9 = pnand %p3134_p1, %p3133_p7 }
  0x46   : > { %p3140_p6 = por %p3139_p4, %p3138_p2 }
  0x47   : > { %p3136_p13 = pneg %p3135_p9 }
  0x49   : > { %p3141_p12 = pnand %p3140_p6, %p3136_p13 }
  0x4b   : > { %3144 = shalt.err (!%p3141_p12)
}
  0x4c   : > { %s3145_s6 = scalar_lea.vmem %s3385_s12, 1024  ;;  %s3241_s9 = smov [#allocation3]  }
  0x4d   : > { %p3146_p0 = scmp.ne.s32.totalorder %s3385_s12, %s3145_s6  ;;  %s3150_s11 = sshll.u32 %s3241_s9, 4  ;;  %s3151_s11 = int_to_ptr.vmem [resolvable:$false] %s3150_s11 }
  0x4e   : > { %s3152_s28 = scalar_lea.vmem %s3151_s11, 2048  ;;  %p3153_p7 = scmp.lt.s32.totalorder %s3385_s12, %s3151_s11 }
  0x4f   : > { %p3148_p5 = pnand %p3146_p0, %p3134_p1  ;;  %p3154_p9 = scmp.lt.s32.totalorder %s3152_s28, %s3145_s6 }
  0x51   : > { %p3149_p3 = pneg %p3148_p5  ;;  %p3155_p10 = por %p3154_p9, %p3153_p7 }
  0x53   : > { %p3156_p8 = pnand %p3155_p10, %p3149_p3 }
  0x55   : > { %3159 = shalt.err (!%p3156_p8)
}
  0x56   : > { %2896 = dma.hbm_to_vmem [thread:$0]  (!%p3381_p11), %s3379_s10, 1024, %s3385_s12, %s3387_s24, %s3239_s14, %s3239_s14, %s3240_s20  }
  0x57   : > { %p4786_p1 = scmp.ne.s32.totalorder %s4781_s23, 0 }
  0x59   : > { %217 = sbr.rel (%p4786_p1) target bundleno = 972 (0x3cc), region = 36 }
  0x5e   : > { %s3414_s25 = sand.u32 1, %s3224_s16   ;;  %p4787_p8 = scmp.ne.s32.totalorder %s4779_s21, 0 }
  0x5f   : > { %s2727_s29 = sshll.u32 %s3414_s25, 6  ;;  %s220_s7 = scalar_lea.sflag [#allocation4], %s3414_s25 }
  0x60   : > { %s3420_s13 = scalar_lea.vmem [#allocation3], %s2727_s29 }
  0x61   : > { %3203 = dma.done.wait (%p4787_p8), %s220_s7, 1024  }
  0x62   : > { %3205 = vsyncadd (%p4787_p8), %s220_s7, 4294966272  ;;  %p4788_p10 = scmp.eq.s32.totalorder %s3294_s19, 0 }
  0x64   : > { %3207 = dma.done.wait (%p4788_p10), [#allocation7], 8192   ;;  %p4789_p11 = pmov %p4788_p10 }
  0x65   : > { %p4790_p13 = pmov %p4788_p10 }
  0x66   : > { %3209 = vsyncadd (%p4789_p11), [#allocation7], 4294959104 }
  0x67   : > { %3211 = dma.done.wait (%p4790_p13), [#allocation10], 1024   ;;  %p4791_p2 = pmov %p4788_p10 }
  0x68   : > { %v3242_v0 = vmov 0.0   ;;  %v322_v1 = vlaneseq  ;;  %v2953_v2 = vld [vmem:[#allocation6 + $0x74] ss:$8 sps:$4 sm:$0xff]   ;;  %v2955_v3 = vld [vmem:[#allocation6 + $0x70] ss:$8 sps:$4 sm:$0xff]   ;;  %v3441_v12 = vld [vmem:[#allocation9] sm:$0xff] }
  0x69   : > { %3213 = vsyncadd (%p4791_p2), [#allocation10], 4294966272  ;;  %269 = vst [vmem:[#allocation2] sm:$0xff] %v3242_v0  ;;  %490 = vmatprep.subr.bf16.mxu0 %v2953_v2  ;;  %747 = vmatprep.subr.bf16.mxu1 %v2953_v2  ;;  %v2956_v4 = vld [vmem:[#allocation6 + $0x64] ss:$8 sps:$4 sm:$0xff]   ;;  %v3439_v11 = vld [vmem:[#allocation9 + $0x10] sm:$0xff] }
  0x6a   : > { %268 = vst [vmem:[#allocation2 + $0x78] sm:$0xff] %v3242_v0  ;;  %270 = vst [vmem:[#allocation2 + $0x10] sm:$0xff] %v3242_v0  ;;  %491 = vmatpush1.bf16.msra.mxu0 %v2955_v3  ;;  %748 = vmatpush1.bf16.msra.mxu1 %v2955_v3  ;;  %v2958_v5 = vld [vmem:[#allocation6 + $0x60] ss:$8 sps:$4 sm:$0xff]   ;;  %v3434_v6 = vshrl.u32 %v322_v1, 7  ;;  %v3447_v17 = vld [vmem:[#allocation9 + $0x18] sm:$0xff] }
  0x6b   : > { %271 = vst [vmem:[#allocation2 + $0xa8] sm:$0xff] %v3242_v0  ;;  %272 = vst [vmem:[#allocation2 + $0x30] sm:$0xff] %v3242_v0  ;;  %492 = vmatprep.subr.bf16.mxu0 %v2956_v4  ;;  %749 = vmatprep.subr.bf16.mxu1 %v2956_v4  ;;  %v2959_v7 = vld [vmem:[#allocation6 + $0x54] ss:$8 sps:$4 sm:$0xff]   ;;  %v2961_v8 = vld [vmem:[#allocation6 + $0x50] ss:$8 sps:$4 sm:$0xff]  }
  0x6c   : > { %273 = vst [vmem:[#allocation2 + $0x28] sm:$0xff] %v3242_v0  ;;  %274 = vst [vmem:[#allocation2 + $0xa0] sm:$0xff] %v3242_v0  ;;  %v3437_v9 = vsub.s32 2, %v3434_v6  ;;  %v2962_v10 = vld [vmem:[#allocation6 + $0x44] ss:$8 sps:$4 sm:$0xff]   ;;  %s3243_s21 = smov 32  }
  0x6d   : > { %275 = vst [vmem:[#allocation2 + $0x88] sm:$0xff] %v3242_v0  ;;  %276 = vst [vmem:[#allocation2 + $0x40] sm:$0xff] %v3242_v0  ;;  %v2964_v13 = vld [vmem:[#allocation6 + $0x40] ss:$8 sps:$4 sm:$0xff]   ;;  %v2965_v16 = vld [vmem:[#allocation6 + $0x34] ss:$8 sps:$4 sm:$0xff]  }
  0x6e   : > { %277 = vst [vmem:[#allocation2 + $0x68] sm:$0xff] %v3242_v0  ;;  %278 = vst [vmem:[#allocation2 + $0x18] sm:$0xff] %v3242_v0  ;;  %493 = vmatpush1.bf16.msra.mxu0 %v2958_v5  ;;  %750 = vmatpush1.bf16.msra.mxu1 %v2958_v5  ;;  %v982_v14 = vrot.slane %v3439_v11, %v3437_v9  ;;  %v974_v15 = vrot.slane %v3441_v12, %v3437_v9  ;;  %v1328_v19 = vsub.s32 5, %v3434_v6  ;;  %v3454_v20 = vld [vmem:[#allocation9 + $0x8] sm:$0xff]  ;;  %v2967_v21 = vld [vmem:[#allocation6 + $0x30] ss:$8 sps:$4 sm:$0xff]  }
  0x6f   : > { %279 = vst [vmem:[#allocation2 + $0x70] sm:$0xff] %v3242_v0  ;;  %280 = vst [vmem:[#allocation2 + $0x98] sm:$0xff] %v3242_v0  ;;  %494 = vmatprep.subr.bf16.mxu0 %v2959_v7  ;;  %751 = vmatprep.subr.bf16.mxu1 %v2959_v7  ;;  %v986_v18 = vrot.slane %v3447_v17, %v3437_v9  ;;  %v978_v22 = vrot.slane %v3454_v20, %v3437_v9  ;;  %v2968_v23 = vld [vmem:[#allocation6 + $0x24] ss:$8 sps:$4 sm:$0xff]   ;;  %v2970_v26 = vld [vmem:[#allocation6 + $0x20] ss:$8 sps:$4 sm:$0xff]  }
  0x70   : > { %281 = vst [vmem:[#allocation2 + $0xb0] sm:$0xff] %v3242_v0  ;;  %282 = vst [vmem:[#allocation2 + $0x58] sm:$0xff] %v3242_v0  ;;  %995 = vrot.lane.b32.xlu1 %v982_v14, %s3243_s21  ;;  %991 = vrot.lane.b32.xlu0 %v974_v15, %s3243_s21  ;;  %v1329_v24 = vrot.slane %v3441_v12, %v1328_v19  ;;  %v1333_v25 = vrot.slane %v3454_v20, %v1328_v19  ;;  %v2971_v27 = vld [vmem:[#allocation6 + $0x14] ss:$8 sps:$4 sm:$0xff]   ;;  %v2973_v30 = vld [vmem:[#allocation6 + $0x10] ss:$8 sps:$4 sm:$0xff]  }
  0x71   : > { %283 = vst [vmem:[#allocation2 + $0x48] sm:$0xff] %v3242_v0  ;;  %4792 = vst [vmem:[#allocation16_spill] sm:$0xff] %v3437_v9  ;;  %v1337_v28 = vrot.slane %v3439_v11, %v1328_v19  ;;  %v1341_v29 = vrot.slane %v3447_v17, %v1328_v19  ;;  %v285_v31 = vld [vmem:[%s3420_s13 + $0x8] sm:$0xff]  ;;  %v815_v32 = vsub.s32 0, %v3434_v6  ;;  %v542_v34 = vld [vmem:[%s3420_s13 + $0x18] sm:$0xff]  ;;  %s3244_s23 = smov 96  }
  0x72   : > { %495 = vmatpush1.bf16.msra.mxu0 %v2961_v8  ;;  %752 = vmatpush1.bf16.msra.mxu1 %v2961_v8  ;;  %v287_v33 = vld [vmem:[%s3420_s13 + $0x28] sm:$0xff]  ;;  %v544_v35 = vld [vmem:[%s3420_s13 + $0x38] sm:$0xff]  ;;  %v3472_v39 = vld [vmem:[#allocation9 + $0x20] sm:$0xf]  ;;  %v3495_v57 = vsub.s32 3, %v3434_v6  ;;  %v3505_v62 = vsub.s32 1, %v3434_v6 }
  0x73   : > { %496 = vmatprep.subr.bf16.mxu0 %v2962_v10  ;;  %753 = vmatprep.subr.bf16.mxu1 %v2962_v10  ;;  %v2974_v36 = vld [vmem:[#allocation6 + $0x4] ss:$8 sps:$4 sm:$0xff]   ;;  %v289_v37 = vpack.c.bf16 %v287_v33, %v285_v31  ;;  %v546_v38 = vpack.c.bf16 %v544_v35, %v542_v34  ;;  %v1742_v40 = vrot.slane %v3472_v39, %v815_v32  ;;  %v3476_v41 = vld [vmem:[#allocation9 + $0x30] sm:$0xf]  ;;  %v3478_v42 = vld [vmem:[#allocation9 + $0x28] sm:$0xf] }
  0x74   : > { %997 = vrot.lane.b32.xlu1 %v986_v18, %s3243_s21  ;;  %993 = vrot.lane.b32.xlu0 %v978_v22, %s3243_s21  ;;  %v3480_v43 = vld [vmem:[#allocation9 + $0x38] sm:$0xf]  ;;  %v2976_v44 = vld [vmem:[#allocation6] ss:$8 sps:$4 sm:$0xff]   ;;  %v1746_v45 = vrot.slane %v3478_v42, %v815_v32  ;;  %v2977_v46 = vld [vmem:[#allocation6 + $0xf4] ss:$8 sps:$4 sm:$0xff]   ;;  %v1750_v48 = vrot.slane %v3476_v41, %v815_v32  ;;  %v816_v52 = vrot.slane %v3441_v12, %v815_v32 }
  0x75   : > { %522 = vmatprep.mubr.bf16.mxu0 %v289_v37  ;;  %779 = vmatprep.mubr.bf16.mxu1 %v546_v38  ;;  %v2979_v47 = vld [vmem:[#allocation6 + $0xf0] ss:$8 sps:$4 sm:$0xff]   ;;  %v1754_v49 = vrot.slane %v3480_v43, %v815_v32  ;;  %v2980_v50 = vld [vmem:[#allocation6 + $0xe4] ss:$8 sps:$4 sm:$0xff]   ;;  %v2982_v51 = vld [vmem:[#allocation6 + $0xe0] ss:$8 sps:$4 sm:$0xff]   ;;  %v820_v53 = vrot.slane %v3454_v20, %v815_v32  ;;  %v824_v56 = vrot.slane %v3439_v11, %v815_v32 }
  0x76   : > { %497 = vmatpush1.bf16.msra.mxu0 %v2964_v13  ;;  %754 = vmatpush1.bf16.msra.mxu1 %v2964_v13  ;;  %v2983_v54 = vld [vmem:[#allocation6 + $0xd4] ss:$8 sps:$4 sm:$0xff]   ;;  %v2985_v55 = vld [vmem:[#allocation6 + $0xd0] ss:$8 sps:$4 sm:$0xff]   ;;  %4793 = vst [vmem:[#allocation17_spill] sm:$0xff] %v3495_v57  ;;  %v828_v58 = vrot.slane %v3447_v17, %v815_v32  ;;  %v1119_v60 = vrot.slane %v3441_v12, %v3495_v57  ;;  %v284_v31 = vld [vmem:[%s3420_s13] sm:$0xff] }
  0x77   : > { %498 = vmatprep.subr.bf16.mxu0 %v2965_v16  ;;  %755 = vmatprep.subr.bf16.mxu1 %v2965_v16  ;;  %v2986_v59 = vld [vmem:[#allocation6 + $0xc4] ss:$8 sps:$4 sm:$0xff]   ;;  %v1123_v61 = vrot.slane %v3454_v20, %v3495_v57  ;;  %v2988_v63 = vld [vmem:[#allocation6 + $0xc0] ss:$8 sps:$4 sm:$0xff]   ;;  %v2989_v0 = vld [vmem:[#allocation6 + $0xb4] ss:$8 sps:$4 sm:$0xff]   ;;  %v1127_v1 = vrot.slane %v3439_v11, %v3495_v57  ;;  %v3513_v2 = vrot.slane %v3441_v12, %v3505_v62 }
  0x78   : > { %1346 = vrot.lane.b32.xlu0 %v1329_v24, %s3243_s21  ;;  %1348 = vrot.lane.b32.xlu1 %v1333_v25, %s3243_s21  ;;  %v1131_v3 = vrot.slane %v3447_v17, %v3495_v57  ;;  %v3519_v4 = vrot.slane %v3454_v20, %v3505_v62  ;;  %v3521_v5 = vld [vmem:[#allocation2] sm:$0x80]  ;;  %v3523_v7 = vld [vmem:[#allocation2 + $0x10] sm:$0x80]  ;;  %v2991_v8 = vld [vmem:[#allocation6 + $0xb0] ss:$8 sps:$4 sm:$0xff]   ;;  %v3527_v13 = vrot.slane %v3439_v11, %v3505_v62 }
  0x79   : > { %v2992_v10 = vld [vmem:[#allocation6 + $0xa4] ss:$8 sps:$4 sm:$0xff]   ;;  %v881_v14 = vmul.f32 %v3513_v2, %v3521_v5  ;;  %v3537_v16 = vrot.slane %v3447_v17, %v3505_v62  ;;  %v3541_v19 = vld [vmem:[#allocation2 + $0x30] sm:$0x80]  ;;  %v1481_v24 = vsub.s32 6, %v3434_v6  ;;  %vm999_vm0 = vcmask 261120  }
  0x7a   : > { %499 = vmatpush1.bf16.msra.mxu0 %v2967_v21  ;;  %756 = vmatpush1.bf16.msra.mxu1 %v2967_v21  ;;  %4794 = vst [vmem:[#allocation18_spill] sm:$0xff] %v3519_v4  ;;  %v882_v15 = vmul.f32 %v3519_v4, %v3523_v7  ;;  %v3539_v18 = vld [vmem:[#allocation2 + $0xa8] sm:$0x80]  ;;  %v2994_v21 = vld [vmem:[#allocation6 + $0xa0] ss:$8 sps:$4 sm:$0xff]   ;;  %v541_v33 = vld [vmem:[%s3420_s13 + $0x10] sm:$0xff] }
  0x7b   : > { %500 = vmatprep.subr.bf16.mxu0 %v2968_v23  ;;  %757 = vmatprep.subr.bf16.mxu1 %v2968_v23  ;;  %4795 = vst [vmem:[#allocation19_spill] sm:$0xff] %v3537_v16  ;;  %v2995_v22 = vld [vmem:[#allocation6 + $0x94] ss:$8 sps:$4 sm:$0xff]   ;;  %v883_v23 = vmul.f32 %v3527_v13, %v3539_v18  ;;  %v884_v25 = vmul.f32 %v3537_v16, %v3541_v19  ;;  %v286_v32 = vld [vmem:[%s3420_s13 + $0x20] sm:$0xff]  ;;  %s3245_s14 = smov 64   ;;  %vm1545_vm1 = vcmask 1045504  }
  0x7c   : > { %1350 = vrot.lane.b32.xlu0 %v1337_v28, %s3243_s21  ;;  %1352 = vrot.lane.b32.xlu1 %v1341_v29, %s3243_s21  ;;  %v1486_v28 = vrot.slane %v3454_v20, %v1481_v24  ;;  %v1482_v29 = vrot.slane %v3441_v12, %v1481_v24  ;;  %v543_v34 = vld [vmem:[%s3420_s13 + $0x30] sm:$0xff]  ;;  %v1494_v35 = vrot.slane %v3447_v17, %v1481_v24  ;;  %vm1172_vm2 = vcmask 1046528   ;;  %s4643_s20 = scalar_lea.vmem [#allocation11], %s2727_s29  ;;  %s2866_s12 = sshll.u32 %s3294_s19, 10 }
  0x7d   : > { %v288_v37 = vpack.c.bf16 %v286_v32, %v284_v31  ;;  %v545_v38 = vpack.c.bf16 %v543_v34, %v541_v33  ;;  %vm841_vm3 = vcmask 785408   ;;  %vm1068_vm4 = vcmask 523264   ;;  %s2615_s10 = sshll.u32 %s4643_s20, 4  ;;  %s4661_s8 = scalar_lea.hbm %s4710_s4, %s2866_s12  ;;  %s4654_s10 = int_to_ptr.vmem [resolvable:$true] %s2615_s10 }
  0x7e   : > { %501 = vmatpush1.bf16.msra.mxu0 %v2970_v26  ;;  %758 = vmatpush1.bf16.msra.mxu1 %v2970_v26  ;;  %v2997_v26 = vld [vmem:[#allocation6 + $0x90] ss:$8 sps:$4 sm:$0xff]   ;;  %vm2014_vm5 = vsmask.f32 4352  ;;  %s2602_s6 = scalar_lea.sflag [#allocation5], %s3414_s25  ;;  %s3160_s9 = scalar_lea.vmem %s4654_s10, 1024 }
  0x7f   : > { %502 = vmatprep.subr.bf16.mxu0 %v2971_v27  ;;  %759 = vmatprep.subr.bf16.mxu1 %v2971_v27  ;;  %v2998_v27 = vld [vmem:[#allocation6 + $0x84] ss:$8 sps:$4 sm:$0xff]   ;;  %p3161_p4 = scmp.ne.s32.totalorder %s4654_s10, %s3160_s9  ;;  %p4956_p6 = scmp.ne.s32.totalorder %s4784_s26, 0 }
  0x80   : > { %1759 = vrot.lane.b32.xlu0 %v1742_v40, %s3243_s21  ;;  %1761 = vrot.lane.b32.xlu1 %v1746_v45, %s3243_s21  ;;  %v1909_v40 = vrot.slane %v3478_v42, %v3437_v9  ;;  %s3246_s19 = smov [#allocation11]  }
  0x81   : > { %p3162_p12 = pnand %p3161_p4, %p4956_p6  ;;  %s3164_s11 = sshll.u32 %s3246_s19, 4  ;;  %s3165_s11 = int_to_ptr.vmem [resolvable:$false] %s3164_s11 }
  0x82   : > { %503 = vmatpush1.bf16.msra.mxu0 %v2973_v30  ;;  %760 = vmatpush1.bf16.msra.mxu1 %v2973_v30  ;;  %v3000_v30 = vld [vmem:[#allocation6 + $0x80] ss:$8 sps:$4 sm:$0xff]   ;;  %s3166_s28 = scalar_lea.vmem %s3165_s11, 2048  ;;  %p3167_p5 = scmp.lt.s32.totalorder %s4654_s10, %s3165_s11 }
  0x83   : > { %504 = vmatprep.subr.bf16.mxu0 %v2974_v36  ;;  %761 = vmatprep.subr.bf16.mxu1 %v2974_v36  ;;  %v1490_v36 = vrot.slane %v3439_v11, %v1481_v24  ;;  %p3163_p0 = pneg %p3162_p12  ;;  %p3168_p3 = scmp.lt.s32.totalorder %s3166_s28, %s3160_s9 }
  0x84   : > { %1763 = vrot.lane.b32.xlu0 %v1750_v48, %s3243_s21  ;;  %1765 = vrot.lane.b32.xlu1 %v1754_v49, %s3243_s21  ;;  %v968_v48 = vld [vmem:[#allocation2 + $0x28] sm:$0x80] }
  0x85   : > { %p3169_p7 = por %p3168_p3, %p3167_p5 }
  0x86   : > { %505 = vmatpush1.bf16.msra.mxu0 %v2976_v44  ;;  %762 = vmatpush1.bf16.msra.mxu1 %v2976_v44  ;;  %v1905_v44 = vrot.slane %v3472_v39, %v3437_v9 }
  0x87   : > { %506 = vmatprep.subr.bf16.mxu0 %v2977_v46  ;;  %763 = vmatprep.subr.bf16.mxu1 %v2977_v46  ;;  %p3170_p9 = pnand %p3169_p7, %p3163_p0 }
  0x88   : > { %833 = vrot.lane.b32.xlu0 %v816_v52, %s3244_s23  ;;  %835 = vrot.lane.b32.xlu1 %v820_v53, %s3244_s23 }
  0x8a   : > { %507 = vmatpush2.bf16.msra.mxu0 %v2979_v47  ;;  %764 = vmatpush2.bf16.msra.mxu1 %v2979_v47 }
  0x8b   : > { %508 = vmatprep.subr.bf16.mxu0 %v2980_v50  ;;  %765 = vmatprep.subr.bf16.mxu1 %v2980_v50 }
  0x8c   : > { %837 = vrot.lane.b32.xlu0 %v824_v56, %s3244_s23  ;;  %839 = vrot.lane.b32.xlu1 %v828_v58, %s3244_s23 }
  0x8e   : > { %509 = vmatpush2.bf16.msra.mxu0 %v2982_v51  ;;  %766 = vmatpush2.bf16.msra.mxu1 %v2982_v51  ;;  %v970_v51 = vld [vmem:[#allocation2 + $0x48] sm:$0x7f] }
  0x8f   : > { %510 = vmatprep.subr.bf16.mxu0 %v2983_v54  ;;  %767 = vmatprep.subr.bf16.mxu1 %v2983_v54 }
  0x90   : > { %1136 = vrot.lane.b32.xlu0 %v1119_v60, %s3244_s23  ;;  %1138 = vrot.lane.b32.xlu1 %v1123_v61, %s3244_s23 }
  0x92   : > { %511 = vmatpush2.bf16.msra.mxu0 %v2985_v55  ;;  %768 = vmatpush2.bf16.msra.mxu1 %v2985_v55 }
  0x93   : > { %512 = vmatprep.subr.bf16.mxu0 %v2986_v59  ;;  %769 = vmatprep.subr.bf16.mxu1 %v2986_v59 }
  0x94   : > { %1140 = vrot.lane.b32.xlu0 %v1127_v1, %s3244_s23  ;;  %1142 = vrot.lane.b32.xlu1 %v1131_v3, %s3244_s23 }
  0x96   : > { %513 = vmatpush2.bf16.msra.mxu0 %v2988_v63  ;;  %770 = vmatpush2.bf16.msra.mxu1 %v2988_v63 }
  0x97   : > { %514 = vmatprep.subr.bf16.mxu0 %v2989_v0  ;;  %771 = vmatprep.subr.bf16.mxu1 %v2989_v0 }
  0x98   : > { %905 = vrot.lane.b32.xlu0 %v881_v14, %s3244_s23  ;;  %907 = vrot.lane.b32.xlu1 %v882_v15, %s3244_s23 }
  0x9a   : > { %515 = vmatpush2.bf16.msra.mxu0 %v2991_v8  ;;  %772 = vmatpush2.bf16.msra.mxu1 %v2991_v8 }
  0x9b   : > { %516 = vmatprep.subr.bf16.mxu0 %v2992_v10  ;;  %773 = vmatprep.subr.bf16.mxu1 %v2992_v10 }
  0x9c   : > { %909 = vrot.lane.b32.xlu0 %v883_v23, %s3244_s23  ;;  %911 = vrot.lane.b32.xlu1 %v884_v25, %s3244_s23 }
  0x9e   : > { %517 = vmatpush2.bf16.msra.mxu0 %v2994_v21  ;;  %774 = vmatpush2.bf16.msra.mxu1 %v2994_v21  ;;  %v1728_v21 = vld [vmem:[#allocation2 + $0x58] sm:$0xfe] }
  0x9f   : > { %518 = vmatprep.subr.bf16.mxu0 %v2995_v22  ;;  %775 = vmatprep.subr.bf16.mxu1 %v2995_v22  ;;  %v1738_v22 = vld [vmem:[#allocation2 + $0x70] sm:$0x1] }
  0xa0   : > { %1501 = vrot.lane.b32.xlu0 %v1486_v28, %s3244_s23  ;;  %1499 = vrot.lane.b32.xlu1 %v1482_v29, %s3244_s23 }
  0xa2   : > { %519 = vmatpush2.bf16.msra.mxu0 %v2997_v26  ;;  %776 = vmatpush2.bf16.msra.mxu1 %v2997_v26 }
  0xa3   : > { %520 = vmatprep.subr.bf16.mxu0 %v2998_v27  ;;  %777 = vmatprep.subr.bf16.mxu1 %v2998_v27 }
  0xa4   : > { %1505 = vrot.lane.b32.xlu0 %v1494_v35, %s3244_s23  ;;  %1503 = vrot.lane.b32.xlu1 %v1490_v36, %s3244_s23 }
  0xa6   : > { %521 = vmatpush2.bf16.msra.mxu0 %v3000_v30  ;;  %778 = vmatpush2.bf16.msra.mxu1 %v3000_v30 }
  0xa8   : > { %1924 = vrot.lane.b32.xlu0 %v1909_v40, %s3244_s23  ;;  %1922 = vrot.lane.b32.xlu1 %v1905_v44, %s3244_s23 }
  0xa9   : > { %523 = vmatmul.mubr.bf16.vlgmr.msra.gmra.mxu0 %v288_v37  ;;  %780 = vmatmul.mubr.bf16.vlgmr.msra.gmra.mxu1 %v545_v38 }
  0xe2   : > { %v996_v45 = vpop.permute.xlu1 %995  ;;  %v3570_v46 = vpop.permute.xlu0 %991 }
  0xe3   : > { %v1008_v47 = vmul.f32 %v3570_v46, %v3521_v5 }
  0xe5   : > { %1038 = vrot.lane.b32.xlu0 %v1008_v47, %s3245_s14 }
  0xe6   : > { %v998_v49 = vpop.permute.xlu1 %997  ;;  %v994_v50 = vpop.permute.xlu0 %993 }
  0xe7   : > { %v1012_v52 = vmul.f32 %v998_v49, %v968_v48  ;;  %v1017_v53 = vmul.f32 0.0, %v998_v49  ;;  %v3577_v54 = vsel %vm999_vm0, %v3570_v46, %v994_v50  ;;  %v1022_v55 = vmul.f32 %v998_v49, %v970_v51 }
  0xe8   : > { %4796 = vst [vmem:[#allocation20_spill] sm:$0xff] %v3577_v54  ;;  %v1009_v56 = vmul.f32 %v3577_v54, %v3523_v7  ;;  %v3584_v58 = vsel %vm999_vm0, %v994_v50, %v996_v45  ;;  %v3587_v59 = vsel %vm999_vm0, %v996_v45, %v998_v49 }
  0xe9   : > { %1046 = vrot.lane.b32.xlu0 %v1012_v52, %s3245_s14  ;;  %1056 = vrot.lane.b32.xlu1 %v1017_v53, %s3245_s14  ;;  %4797 = vst [vmem:[#allocation21_spill] sm:$0xff] %v3584_v58  ;;  %4798 = vst [vmem:[#allocation22_spill] sm:$0xff] %v3587_v59  ;;  %v1010_v63 = vmul.f32 %v3584_v58, %v3539_v18  ;;  %v1011_v0 = vmul.f32 %v3587_v59, %v3541_v19 }
  0xea   : > { %v3589_v60 = vpop.permute.xlu0 %1346  ;;  %v3591_v61 = vpop.permute.xlu1 %1348 }
  0xeb   : > { %4799 = vst [vmem:[#allocation23_spill] sm:$0xff] %v3589_v60  ;;  %4800 = vst [vmem:[#allocation24_spill] sm:$0xff] %v3591_v61 }
  0xed   : > { %1066 = vrot.lane.b32.xlu0 %v1022_v55, %s3245_s14  ;;  %1040 = vrot.lane.b32.xlu1 %v1009_v56, %s3245_s14  ;;  %v3643_v56 = vld [vmem:[#allocation2 + $0x88] sm:$0x1] }
  0xee   : > { %v3599_v1 = vpop.permute.xlu0 %1350  ;;  %v3601_v3 = vpop.permute.xlu1 %1352 }
  0xef   : > { %4801 = vst [vmem:[#allocation25_spill] sm:$0xff] %v3599_v1  ;;  %4802 = vst [vmem:[#allocation26_spill] sm:$0xff] %v3601_v3  ;;  %v1366_v8 = vmul.f32 0.0, %v3601_v3 }
  0xf1   : > { %1042 = vrot.lane.b32.xlu0 %v1010_v63, %s3245_s14  ;;  %1044 = vrot.lane.b32.xlu1 %v1011_v0, %s3245_s14  ;;  %v1386_v10 = vrot.slane %v1366_v8, 1 }
  0xf2   : > { %v3606_v14 = vpop.permute.xlu0 %1759  ;;  %v3608_v15 = vpop.permute.xlu1 %1761 }
  0xf3   : > { %4803 = vst [vmem:[#allocation27_spill] sm:$0xff] %v3606_v14 }
  0xf5   : > { %1405 = vrot.lane.b32.xlu1 %v1386_v10, %s3245_s14 }
  0xf6   : > { %v3611_v23 = vpop.permute.xlu0 %1763  ;;  %v3613_v24 = vpop.permute.xlu1 %1765 }
  0xf7   : > { %v1779_v25 = vmul.f32 %v3613_v24, %v1728_v21  ;;  %v1784_v26 = vmul.f32 0.0, %v3613_v24  ;;  %v1789_v27 = vmul.f32 %v3613_v24, %v1738_v22  ;;  %v3655_v21 = vld [vmem:[#allocation2 + $0x40] sm:$0x1]  ;;  %v3657_v22 = vld [vmem:[#allocation2 + $0x68] sm:$0x1] }
  0xf8   : > { %4807 = vst [vmem:[#allocation31_spill] sm:$0xff] %v3655_v21 }
  0xf9   : > { %v1809_v28 = vrot.slane %v1779_v25, 2  ;;  %1425 = vrot.lane.b32.xlu1 %v1386_v10, %s3245_s14  ;;  %v1818_v29 = vrot.slane %v1784_v26, 2  ;;  %v1828_v33 = vrot.slane %v1789_v27, 2 }
  0xfa   : > { %v3619_v30 = vpop.permute.xlu0 %833  ;;  %v836_v31 = vpop.permute.xlu1 %835 }
  0xfb   : > { %4804 = vst [vmem:[#allocation28_spill] sm:$0xff] %v3619_v30  ;;  %1838 = vrot.lane.b32.xlu0 %v1809_v28, %s3245_s14  ;;  %v1819_v32 = vsel %vm1545_vm1, %v1809_v28, %v1818_v29  ;;  %v1829_v36 = vsel %vm1545_vm1, %v1818_v29, %v1828_v33  ;;  %v798_v33 = vld [vmem:[#allocation2 + $0x78] sm:$0x80] }
  0xfd   : > { %1848 = vrot.lane.b32.xlu1 %v1819_v32, %s3245_s14 }
  0xfe   : > { %v838_v34 = vpop.permute.xlu0 %837  ;;  %v3624_v35 = vpop.permute.xlu1 %839 }
  0xff   : > { %4805 = vst [vmem:[#allocation29_spill] sm:$0xff] %v3624_v35  ;;  %1415 = vrot.lane.b32.xlu0 %v1386_v10, %s3245_s14  ;;  %v3690_v3 = vsel %vm841_vm3, %v836_v31, %v838_v34 }
 0x100   : > { %4812 = vst [vmem:[#allocation36_spill] sm:$0xff] %v3690_v3 }
 0x102   : > { %v1137_v37 = vpop.permute.xlu0 %1136  ;;  %v1139_v38 = vpop.permute.xlu1 %1138 }
 0x103   : > { %v3629_v40 = vsel %vm841_vm3, %v1137_v37, %v1139_v38  ;;  %1858 = vrot.lane.b32.xlu0 %v1829_v36, %s3245_s14  ;;  %v850_v36 = vmul.f32 %v3619_v30, %v798_v33 }
 0x106   : > { %v3632_v44 = vpop.permute.xlu0 %1140  ;;  %v3634_v45 = vpop.permute.xlu1 %1142 }
 0x107   : > { %v3638_v47 = vsel %vm841_vm3, %v1139_v38, %v3632_v44 }
 0x10a   : > { %v906_v48 = vpop.permute.xlu0 %905  ;;  %v908_v49 = vpop.permute.xlu1 %907 }
 0x10b   : > { %v929_v50 = vsel %vm841_vm3, %v906_v48, %v908_v49 }
 0x10e   : > { %v910_v51 = vpop.permute.xlu0 %909  ;;  %v912_v52 = vpop.permute.xlu1 %911 }
 0x10f   : > { %v930_v53 = vsel %vm841_vm3, %v908_v49, %v910_v51  ;;  %v931_v55 = vsel %vm841_vm3, %v910_v51, %v912_v52  ;;  %v1152_v49 = vmul.f32 0.0, %v1137_v37  ;;  %v953_v51 = vadd.f32 %v906_v48, %v850_v36 }
 0x110   : > { %v3694_v37 = vsel %vm841_vm3, %v838_v34, %v3624_v35 }
 0x111   : > { %v3685_v57 = vrot.slane %v1152_v49, 1  ;;  %4813 = vst [vmem:[#allocation37_spill] sm:$0xff] %v3694_v37  ;;  %v852_v49 = vmul.f32 %v3690_v3, %v3523_v7  ;;  %v325_v7 = vrot.slane %v3472_v39, %v3505_v62  ;;  %v3799_v3 = vsel %vm999_vm0, %v3591_v61, %v3599_v1 }
 0x112   : > { %v1502_v63 = vpop.permute.xlu0 %1501  ;;  %v3645_v0 = vpop.permute.xlu1 %1499  ;;  %4822 = vst [vmem:[#allocation46_spill] sm:$0xff] %v3799_v3  ;;  %v3827_v1 = vsel %vm999_vm0, %v3611_v23, %v3613_v24 }
 0x113   : > { %4806 = vst [vmem:[#allocation30_spill] sm:$0xff] %v3645_v0  ;;  %v3649_v8 = vsel %vm841_vm3, %v3645_v0, %v1502_v63  ;;  %4811 = vst [vmem:[#allocation35_spill] sm:$0xff] %v3685_v57 }
 0x114   : > { %v3653_v10 = vmul.f32 %v3649_v8, %v3643_v56  ;;  %4827 = vst [vmem:[#allocation51_spill] sm:$0xff] %v3827_v1 }
 0x116   : > { %v3659_v25 = vpop.permute.xlu0 %1505  ;;  %v1504_v26 = vpop.permute.xlu1 %1503 }
 0x117   : > { %v3662_v27 = vsel %vm841_vm3, %v1502_v63, %v1504_v26  ;;  %v3666_v28 = vsel %vm841_vm3, %v1504_v26, %v3659_v25  ;;  %v3683_v26 = vsel %vm841_vm3, %v3619_v30, %v836_v31  ;;  %v853_v31 = vmul.f32 %v3694_v37, %v3539_v18 }
 0x118   : > { %v3670_v29 = vmul.f32 %v3662_v27, %v3655_v21  ;;  %v3674_v32 = vmul.f32 %v3666_v28, %v3657_v22  ;;  %4810 = vst [vmem:[#allocation34_spill] sm:$0xff] %v3683_v26  ;;  %v851_v21 = vmul.f32 %v3683_v26, %v3521_v5  ;;  %v854_v5 = vmul.f32 %v3624_v35, %v3541_v19 }
 0x119   : > { %v329_v19 = vrot.slane %v3478_v42, %v3505_v62 }
 0x11a   : > { %v3677_v38 = vpop.permute.xlu0 %1924  ;;  %v3679_v63 = vpop.permute.xlu1 %1922  ;;  %v957_v26 = vadd.f32 %v912_v52, %v854_v5 }
 0x11b   : > { %4808 = vst [vmem:[#allocation32_spill] sm:$0xff] %v3677_v38  ;;  %4809 = vst [vmem:[#allocation33_spill] sm:$0xff] %v3679_v63  ;;  %v955_v63 = vadd.f32 %v930_v53, %v852_v49 }
 0x157   : > { %v1039_v0 = vpop.permute.xlu0 %1038 }
 0x158   : > { %v1096_v9 = vadd.f32 %v1039_v0, %v953_v51  ;;  %v954_v51 = vadd.f32 %v929_v50, %v851_v21  ;;  %v582_v50 = vrot.slane %v3476_v41, %v3505_v62 }
 0x15a   : > { %v3697_v48 = vadd.f32 %v3685_v57, %v1096_v9  ;;  %v3810_v57 = vsel %vm999_vm0, %v3606_v14, %v3608_v15 }
 0x15b   : > { %v1047_v33 = vpop.permute.xlu0 %1046  ;;  %v3699_v36 = vpop.permute.xlu1 %1056  ;;  %4824 = vst [vmem:[#allocation48_spill] sm:$0xff] %v3810_v57 }
 0x15c   : > { %4814 = vst [vmem:[#allocation38_spill] sm:$0xff] %v3697_v48  ;;  %4815 = vst [vmem:[#allocation39_spill] sm:$0xff] %v3699_v36  ;;  %v956_v48 = vadd.f32 %v931_v55, %v853_v31 }
 0x15f   : > { %v3707_v38 = vpop.permute.xlu0 %1066  ;;  %v1041_v34 = vpop.permute.xlu1 %1040 }
 0x160   : > { %4816 = vst [vmem:[#allocation40_spill] sm:$0xff] %v3707_v38  ;;  %v1069_v9 = vsel %vm1068_vm4, %v1039_v0, %v1041_v34  ;;  %v586_v38 = vrot.slane %v3480_v43, %v3505_v62 }
 0x161   : > { %v3710_v36 = vadd.f32 %v1069_v9, %v954_v51 }
 0x163   : > { %v1043_v18 = vpop.permute.xlu0 %1042  ;;  %v1045_v21 = vpop.permute.xlu1 %1044 }
 0x164   : > { %v1070_v53 = vsel %vm1068_vm4, %v1041_v34, %v1043_v18  ;;  %v1071_v52 = vsel %vm1068_vm4, %v1043_v18, %v1045_v21  ;;  %v1072_v55 = vsel %vm1068_vm4, %v1045_v21, %v1047_v33 }
 0x165   : > { %v3723_v39 = vadd.f32 %v1070_v53, %v955_v63  ;;  %v3725_v51 = vadd.f32 %v1071_v52, %v956_v48  ;;  %v3727_v41 = vadd.f32 %v1072_v55, %v957_v26 }
 0x169   : > { %v524_v0 = vpop.f32.mrf.mxu0  ;;  %v781_v49 = vpop.f32.mrf.mxu1 }
 0x16a   : > { %v525_v42 = vadd.f32 %v524_v0, %v325_v7  ;;  %v782_v5 = vadd.f32 %v781_v49, %v582_v50 }
 0x16b   : > { %v526_v31 = vpop.f32.mrf.mxu0  ;;  %v783_v9 = vpop.f32.mrf.mxu1 }
 0x16c   : > { %v3729_v37 = vmax.f32 %v525_v42, 0.0  ;;  %v3731_v43 = vmax.f32 %v782_v5, 0.0  ;;  %v527_v62 = vadd.f32 %v526_v31, %v329_v19  ;;  %v784_v34 = vadd.f32 %v783_v9, %v586_v38 }
 0x16d   : > { %v528_v18 = vpop.f32.mrf.mxu0  ;;  %v785_v33 = vpop.f32.mrf.mxu1 }
 0x16e   : > { %4817 = vst [vmem:[#allocation41_spill] sm:$0xff] %v3729_v37  ;;  %4818 = vst [vmem:[#allocation42_spill] sm:$0xff] %v3731_v43  ;;  %v3735_v63 = vmax.f32 %v527_v62, 0.0  ;;  %v3737_v26 = vmax.f32 %v784_v34, 0.0  ;;  %v529_v48 = vadd.f32 %v528_v18, %v325_v7  ;;  %v786_v21 = vadd.f32 %v785_v33, %v582_v50 }
 0x16f   : > { %537 = vst [vmem:[#allocation2 + $0x50] sm:$0xff] %v3729_v37  ;;  %794 = vst [vmem:[#allocation2 + $0x38] sm:$0xff] %v3731_v43  ;;  %v530_v53 = vpop.f32.mrf.mxu0  ;;  %v787_v52 = vpop.f32.mrf.mxu1  ;;  %v1013_v55 = vmul.f32 %v3570_v46, %v3729_v37  ;;  %v885_v0 = vmul.f32 %v3513_v2, %v3729_v37  ;;  %v1603_v7 = vsub.s32 7, %v3434_v6  ;;  %v887_v50 = vmul.f32 %v3527_v13, %v3731_v43 }
 0x170   : > { %538 = vst [vmem:[#allocation2 + $0x60] sm:$0xff] %v3735_v63  ;;  %795 = vst [vmem:[#allocation2 + $0x80] sm:$0xff] %v3737_v26  ;;  %v3745_v49 = vmax.f32 %v529_v48, 0.0  ;;  %v3747_v42 = vmax.f32 %v786_v21, 0.0  ;;  %v531_v5 = vadd.f32 %v530_v53, %v329_v19  ;;  %v788_v31 = vadd.f32 %v787_v52, %v586_v38 }
 0x171   : > { %1048 = vrot.lane.b32.xlu1 %v1013_v55, %s3245_s14  ;;  %913 = vrot.lane.b32.xlu0 %v885_v0, %s3244_s23  ;;  %v1220_v19 = vsub.s32 4, %v3434_v6  ;;  %v1015_v38 = vmul.f32 %v3584_v58, %v3731_v43  ;;  %v1612_v18 = vrot.slane %v3439_v11, %v1603_v7  ;;  %v1604_v48 = vrot.slane %v3441_v12, %v1603_v7 }
 0x172   : > { %539 = vst [vmem:[#allocation2 + $0x90] sm:$0xff] %v3745_v49  ;;  %796 = vst [vmem:[#allocation2 + $0x20] sm:$0xff] %v3747_v42  ;;  %v3756_v9 = vmax.f32 %v531_v5, 0.0  ;;  %v3758_v62 = vmax.f32 %v788_v31, 0.0  ;;  %v886_v55 = vmul.f32 %v3519_v4, %v3735_v63  ;;  %v1014_v0 = vmul.f32 %v3577_v54, %v3735_v63 }
 0x173   : > { %v3773_v6 = vrot.slane %v3441_v12, %v1220_v19  ;;  %v1229_v52 = vrot.slane %v3439_v11, %v1220_v19  ;;  %v3784_v31 = vrot.slane %v3447_v17, %v1603_v7  ;;  %v1627_v12 = vmul.f32 %v1612_v18, %v3657_v22 }
 0x174   : > { %540 = vst [vmem:[#allocation2 + $0xb8] sm:$0xff] %v3756_v9  ;;  %797 = vst [vmem:[#allocation2 + $0x8] sm:$0xff] %v3758_v62  ;;  %v1625_v35 = vmul.f32 %v1604_v48, %v3643_v56  ;;  %v888_v56 = vmul.f32 %v3537_v16, %v3737_v26  ;;  %v1016_v30 = vmul.f32 %v3587_v59, %v3737_v26 }
 0x175   : > { %1052 = vrot.lane.b32.xlu1 %v1015_v38, %s3245_s14  ;;  %917 = vrot.lane.b32.xlu0 %v887_v50, %s3244_s23  ;;  %4819 = vst [vmem:[#allocation43_spill] sm:$0xff] %v3773_v6  ;;  %4820 = vst [vmem:[#allocation44_spill] sm:$0xff] %v3784_v31  ;;  %v3787_v50 = vrot.slane %v3454_v20, %v1603_v7  ;;  %v3803_v7 = vmul.f32 %v3773_v6, %v3729_v37 }
 0x176   : > { %v1472_v34 = vld [vmem:[#allocation2 + $0x38] sm:$0xfe]  ;;  %v1470_v33 = vld [vmem:[#allocation2 + $0x50] sm:$0xfe]  ;;  %v1236_v22 = vmul.f32 %v1229_v52, %v3731_v43  ;;  %v3821_v6 = vsel %vm999_vm0, %v3608_v15, %v3611_v23  ;;  %v1233_v61 = vrot.slane %v3447_v17, %v1220_v19  ;;  %v1653_v59 = vrot.slane %v1625_v35, 2 }
 0x177   : > { %v3770_v21 = vmul.f32 %v3666_v28, %v1472_v34  ;;  %v3776_v53 = vmul.f32 %v3649_v8, %v1470_v33  ;;  %v1471_v5 = vld [vmem:[#allocation2 + $0x60] sm:$0xfe]  ;;  %4821 = vst [vmem:[#allocation45_spill] sm:$0xff] %v3787_v50  ;;  %v1724_v11 = vld [vmem:[#allocation2 + $0x50] sm:$0xfe]  ;;  %4823 = vst [vmem:[#allocation47_spill] sm:$0xff] %v3803_v7  ;;  %v3816_v54 = vmul.f32 %v1604_v48, %v1470_v33 }
 0x178   : > { %v3793_v38 = vmul.f32 %v3662_v27, %v1471_v5  ;;  %4826 = vst [vmem:[#allocation50_spill] sm:$0xff] %v3821_v6  ;;  %v3834_v33 = vmul.f32 %v3589_v60, %v3729_v37  ;;  %v4747_v16 = vrot.slane %v3803_v7, 1  ;;  %v1252_v4 = vrot.slane %v1236_v22, 1  ;;  %v1725_v22 = vld [vmem:[#allocation2 + $0x60] sm:$0xfe] }
 0x179   : > { %915 = vrot.lane.b32.xlu1 %v886_v55, %s3244_s23  ;;  %1050 = vrot.lane.b32.xlu0 %v1014_v0, %s3245_s14  ;;  %v1726_v55 = vld [vmem:[#allocation2 + $0x38] sm:$0xfe]  ;;  %v1225_v0 = vrot.slane %v3454_v20, %v1220_v19  ;;  %4825 = vst [vmem:[#allocation49_spill] sm:$0xff] %v3816_v54  ;;  %v1775_v20 = vmul.f32 %v3606_v14, %v1724_v11  ;;  %v1657_v11 = vrot.slane %v1627_v12, 2 }
 0x17a   : > { %v3837_v15 = vmul.f32 %v3821_v6, %v1726_v55  ;;  %v3840_v23 = vmul.f32 %v1612_v18, %v1472_v34  ;;  %v3844_v17 = vmul.f32 %v3799_v3, %v3731_v43  ;;  %v3850_v19 = vmul.f32 %v1229_v52, %v3747_v42 }
 0x17b   : > { %v3853_v55 = vmul.f32 %v1604_v48, %v3745_v49  ;;  %v3856_v35 = vmul.f32 %v1612_v18, %v3747_v42  ;;  %v1805_v12 = vrot.slane %v1775_v20, 2  ;;  %v3859_v34 = vmul.f32 %v3787_v50, %v1471_v5 }
 0x17c   : > { %v3867_v24 = vmul.f32 %v3821_v6, %v3747_v42  ;;  %v4829_v18 = vrot.slane %v3816_v54, 2  ;;  %v1807_v48 = vrot.slane %v3837_v15, 2  ;;  %v3884_v7 = vmul.f32 %v1225_v0, %v3735_v63 }
 0x17d   : > { %919 = vrot.lane.b32.xlu1 %v888_v56, %s3244_s23  ;;  %1054 = vrot.lane.b32.xlu0 %v1016_v30, %s3245_s14  ;;  %v3847_v30 = vld [vmem:[#allocation2 + $0x80] sm:$0xfe]  ;;  %4828 = vst [vmem:[#allocation52_spill] sm:$0xff] %v3853_v55  ;;  %v3863_v56 = vmul.f32 %v3606_v14, %v3745_v49  ;;  %v4754_v5 = vrot.slane %v3853_v55, 2  ;;  %v3892_v52 = vmul.f32 %v3810_v57, %v1725_v22  ;;  %v4830_v60 = vrot.slane %v3850_v19, 1 }
 0x17e   : > { %v3881_v6 = vmul.f32 %v3784_v31, %v3847_v30  ;;  %v1727_v14 = vld [vmem:[#allocation2 + $0x80] sm:$0xfe]  ;;  %v4755_v54 = vrot.slane %v3867_v24, 2 }
 0x17f   : > { %v3897_v20 = vsel %vm1545_vm1, %v4754_v5, %v1653_v59  ;;  %v3904_v58 = vsel %vm1172_vm2, %v1252_v4, %v4830_v60  ;;  %v4832_v22 = vrot.slane %v3863_v56, 2  ;;  %v4833_v59 = vrot.slane %v3840_v23, 2 }
 0x180   : > { %v1642_v5 = vrot.slane %v3859_v34, 2  ;;  %v3922_v60 = vmul.f32 %v3827_v1, %v1727_v14  ;;  %v3942_v14 = vmul.f32 %v3784_v31, %v3758_v62  ;;  %v4838_v31 = vrot.slane %v3834_v33, 1 }
 0x181   : > { %1262 = vrot.lane.b32.xlu1 %v4747_v16, %s3244_s23  ;;  %1661 = vrot.lane.b32.xlu0 %v4829_v18, %s3244_s23  ;;  %v3887_v16 = vmul.f32 %v1233_v61, %v3737_v26  ;;  %v4831_v18 = vrot.slane %v3856_v35, 2  ;;  %v3914_v55 = vsel %vm1545_vm1, %v1805_v12, %v4832_v22  ;;  %v3949_v22 = vmul.f32 %v3810_v57, %v3756_v9 }
 0x182   : > { %4836 = vst [vmem:[#allocation55_spill] sm:$0xff] %v3942_v14  ;;  %v4842_v34 = vrot.slane %v3881_v6, 2 }
 0x183   : > { %v3909_v15 = vsel %vm1545_vm1, %v4831_v18, %v1657_v11  ;;  %v3927_v11 = vsel %vm1545_vm1, %v1807_v48, %v4755_v54  ;;  %v3930_v18 = vmul.f32 %v1225_v0, %v3756_v9  ;;  %v4760_v54 = vrot.slane %v3884_v7, 1  ;;  %4837 = vst [vmem:[#allocation56_spill] sm:$0xff] %v3949_v22 }
 0x184   : > { %4834 = vst [vmem:[#allocation53_spill] sm:$0xff] %v3927_v11  ;;  %v3970_v11 = vmul.f32 %v3827_v1, %v3758_v62  ;;  %v4845_v1 = vrot.slane %v3887_v16, 1 }
 0x185   : > { %1266 = vrot.lane.b32.xlu1 %v1252_v4, %s3244_s23  ;;  %1665 = vrot.lane.b32.xlu0 %v4833_v59, %s3244_s23  ;;  %v3934_v4 = vmul.f32 %v1233_v61, %v3758_v62  ;;  %v3938_v59 = vmul.f32 %v3787_v50, %v3756_v9  ;;  %v4759_v0 = vrot.slane %v3930_v18, 1 }
 0x186   : > { %4840 = vst [vmem:[#allocation58_spill] sm:$0xff] %v3970_v11 }
 0x187   : > { %4835 = vst [vmem:[#allocation54_spill] sm:$0xff] %v3938_v59  ;;  %v4762_v50 = vrot.slane %v3938_v59, 2  ;;  %v3965_v61 = vsel %vm1172_vm2, %v4760_v54, %v4759_v0  ;;  %v3985_v54 = vld [vmem:[#allocation2 + $0x90] sm:$0x7f]  ;;  %v4844_v3 = vrot.slane %v3934_v4, 1 }
 0x188   : > { %4839 = vst [vmem:[#allocation57_spill] sm:$0xff] %v3965_v61  ;;  %v4005_v0 = vld [vmem:[#allocation2 + $0x20] sm:$0x7f] }
 0x189   : > { %1397 = vrot.lane.b32.xlu1 %v4838_v31, %s3245_s14  ;;  %1830 = vrot.lane.b32.xlu0 %v1805_v12, %s3245_s14  ;;  %v3975_v31 = vsel %vm1545_vm1, %v1642_v5, %v4762_v50  ;;  %v4841_v12 = vrot.slane %v3942_v14, 2  ;;  %v3992_v61 = vsel %vm1172_vm2, %v4845_v1, %v4844_v3  ;;  %v4846_v50 = vrot.slane %v3949_v22, 2 }
 0x18a   : > { %v4847_v14 = vrot.slane %v3892_v52, 2  ;;  %v1565_v3 = vrot.slane %v3670_v29, 2  ;;  %v1567_v22 = vrot.slane %v3674_v32, 2  ;;  %v4026_v29 = vmul.f32 %v3659_v25, %v3847_v30 }
 0x18b   : > { %v3982_v57 = vsel %vm1545_vm1, %v4842_v34, %v4841_v12  ;;  %v4766_v34 = vrot.slane %v3970_v11, 2  ;;  %v1146_v12 = vsel %vm841_vm3, %v3632_v44, %v3634_v45  ;;  %v4849_v44 = vrot.slane %v3922_v60, 2 }
 0x18c   : > { %4843 = vst [vmem:[#allocation59_spill] sm:$0xff] %v3982_v57  ;;  %v3999_v59 = vsel %vm1545_vm1, %v4847_v14, %v4846_v50  ;;  %v1563_v57 = vrot.slane %v3653_v10, 2  ;;  %v4848_v50 = vrot.slane %v3844_v17, 1  ;;  %v889_v10 = vmul.f32 %v3513_v2, %v3985_v54 }
 0x18d   : > { %1834 = vrot.lane.b32.xlu0 %v1807_v48, %s3245_s14  ;;  %v4020_v14 = vsel %vm1545_vm1, %v4849_v44, %v4766_v34  ;;  %v1153_v32 = vmul.f32 %v3629_v40, %v3729_v37  ;;  %v1154_v48 = vmul.f32 %v3638_v47, %v3735_v63  ;;  %v1155_v1 = vmul.f32 %v1146_v12, %v3731_v43 }
 0x18e   : > { %1401 = vrot.lane.b32.xlu1 %v4848_v50, %s3245_s14  ;;  %4850 = vst [vmem:[#allocation60_spill] sm:$0xff] %v4020_v14  ;;  %v891_v50 = vmul.f32 %v3527_v13, %v4005_v0  ;;  %v1156_v44 = vmul.f32 %v3634_v45, %v3737_v26  ;;  %v4041_v11 = vmul.f32 %v3629_v40, %v3745_v49 }
 0x18f   : > { %v1174_v34 = vrot.slane %v1153_v32, 1  ;;  %v1175_v14 = vrot.slane %v1154_v48, 1  ;;  %v1176_v13 = vrot.slane %v1155_v1, 1  ;;  %v4047_v43 = vmul.f32 %v3638_v47, %v3756_v9 }
 0x190   : > { %v1177_v37 = vrot.slane %v1156_v44, 1  ;;  %v4050_v2 = vmul.f32 %v1146_v12, %v3747_v42  ;;  %v4770_v40 = vrot.slane %v4041_v11, 1  ;;  %v1522_v44 = vmul.f32 %v3662_v27, %v3756_v9 }
 0x191   : > { %921 = vrot.lane.b32.xlu0 %v889_v10, %s3244_s23  ;;  %v4053_v32 = vadd.f32 %v1174_v34, %v3710_v36  ;;  %v4056_v48 = vadd.f32 %v1175_v14, %v3723_v39  ;;  %v4064_v1 = vadd.f32 %v1176_v13, %v3725_v51  ;;  %v4771_v12 = vrot.slane %v4047_v43, 1 }
 0x192   : > { %1663 = vrot.lane.b32.xlu1 %v1642_v5, %s3244_s23  ;;  %v4061_v5 = vmul.f32 %v3634_v45, %v3758_v62  ;;  %v4067_v47 = vadd.f32 %v1177_v37, %v3727_v41  ;;  %v4775_v36 = vrot.slane %v4050_v2, 1  ;;  %v1521_v39 = vmul.f32 %v3649_v8, %v3745_v49 }
 0x193   : > { %v4079_v45 = vsel %vm1172_vm2, %v1174_v34, %v4770_v40  ;;  %v4851_v51 = vrot.slane %v3881_v6, 2  ;;  %v4774_v41 = vrot.slane %v4026_v29, 2  ;;  %v4089_v8 = vsel %vm1172_vm2, %v1175_v14, %v4771_v12 }
 0x194   : > { %v4772_v10 = vrot.slane %v4061_v5, 1  ;;  %v1523_v27 = vmul.f32 %v3666_v28, %v3747_v42  ;;  %v4095_v34 = vmul.f32 %v3659_v25, %v3758_v62  ;;  %v1553_v40 = vrot.slane %v1521_v39, 2 }
 0x195   : > { %925 = vrot.lane.b32.xlu0 %v891_v50, %s3244_s23  ;;  %v1555_v30 = vrot.slane %v1522_v44, 2  ;;  %v4100_v6 = vsel %vm1172_vm2, %v1176_v13, %v4775_v36  ;;  %v1018_v14 = vmul.f32 %v3570_v46, %v3985_v54  ;;  %v4852_v13 = vrot.slane %v3776_v53, 2 }
 0x196   : > { %1667 = vrot.lane.b32.xlu1 %v4851_v51, %s3244_s23  ;;  %v4105_v50 = vsel %vm1172_vm2, %v1177_v37, %v4772_v10  ;;  %v1557_v28 = vrot.slane %v1523_v27, 2  ;;  %v4773_v51 = vrot.slane %v4095_v34, 2  ;;  %v4111_v12 = vsel %vm1545_vm1, %v1553_v40, %v1563_v57 }
 0x197   : > { %v4114_v39 = vsel %vm1545_vm1, %v1555_v30, %v1565_v3  ;;  %v4119_v44 = vsel %vm1545_vm1, %v4852_v13, %v1553_v40  ;;  %v4854_v37 = vrot.slane %v3793_v38, 2  ;;  %v4856_v46 = vrot.slane %v3892_v52, 2  ;;  %v4860_v52 = vld [vmem:[#allocation21_spill] sm:$0xff]  ;;  %v4147_v13 = vld [vmem:[#allocation2 + $0xb8] sm:$0x7f] }
 0x198   : > { %4853 = vst [vmem:[#allocation61_spill] sm:$0xff] %v4119_v44  ;;  %v4131_v57 = vsel %vm1545_vm1, %v1557_v28, %v1567_v22  ;;  %v4138_v3 = vsel %vm1545_vm1, %v4774_v41, %v4773_v51  ;;  %v4858_v40 = vrot.slane %v3770_v21, 2  ;;  %v1020_v27 = vmul.f32 %v4860_v52, %v4005_v0  ;;  %v4865_v52 = vld [vmem:[#allocation23_spill] sm:$0xff]  ;;  %v4869_v41 = vld [vmem:[#allocation25_spill] sm:$0xff] }
 0x199   : > { %v4124_v10 = vsel %vm1545_vm1, %v4854_v37, %v1555_v30  ;;  %1058 = vrot.lane.b32.xlu0 %v1018_v14, %s3245_s14  ;;  %4857 = vst [vmem:[#allocation63_spill] sm:$0xff] %v4138_v3  ;;  %v4861_v22 = vrot.slane %v3922_v60, 2  ;;  %v4862_v14 = vld [vmem:[#allocation18_spill] sm:$0xff]  ;;  %v4866_v60 = vld [vmem:[#allocation19_spill] sm:$0xff] }
 0x19a   : > { %4855 = vst [vmem:[#allocation62_spill] sm:$0xff] %v4124_v10  ;;  %1832 = vrot.lane.b32.xlu1 %v4856_v46, %s3245_s14  ;;  %v4143_v30 = vsel %vm1545_vm1, %v4858_v40, %v1557_v28  ;;  %v890_v37 = vmul.f32 %v4862_v14, %v4147_v13  ;;  %v4155_v46 = vld [vmem:[#allocation2 + $0x8] sm:$0x7f]  ;;  %v4863_v28 = vrot.slane %v3884_v7, 1  ;;  %v4864_v40 = vld [vmem:[#allocation24_spill] sm:$0xff]  ;;  %v4867_v14 = vrot.slane %v3887_v16, 1 }
 0x19b   : > { %4859 = vst [vmem:[#allocation64_spill] sm:$0xff] %v4143_v30  ;;  %v1354_v51 = vsel %vm999_vm0, %v4865_v52, %v4864_v40  ;;  %v4871_v16 = vld [vmem:[#allocation22_spill] sm:$0xff]  ;;  %v4872_v3 = vld [vmem:[#allocation43_spill] sm:$0xff] }
 0x19d   : > { %1062 = vrot.lane.b32.xlu0 %v1020_v27, %s3245_s14  ;;  %v1363_v27 = vmul.f32 %v1354_v51, %v3735_v63 }
 0x19e   : > { %1836 = vrot.lane.b32.xlu1 %v4861_v22, %s3245_s14  ;;  %v892_v22 = vmul.f32 %v4866_v60, %v4155_v46  ;;  %v1367_v60 = vmul.f32 %v4865_v52, %v3745_v49 }
 0x19f   : > { %v1383_v30 = vrot.slane %v1363_v27, 1 }
 0x1a1   : > { %1264 = vrot.lane.b32.xlu0 %v4863_v28, %s3244_s23  ;;  %v4870_v28 = vld [vmem:[#allocation20_spill] sm:$0xff] }
 0x1a2   : > { %923 = vrot.lane.b32.xlu1 %v890_v37, %s3244_s23  ;;  %v4868_v37 = vld [vmem:[#allocation26_spill] sm:$0xff]  ;;  %v1019_v36 = vmul.f32 %v4870_v28, %v4147_v13 }
 0x1a3   : > { %v1356_v7 = vsel %vm999_vm0, %v4869_v41, %v4868_v37  ;;  %v1238_v41 = vmul.f32 %v4872_v3, %v3745_v49  ;;  %v1387_v37 = vrot.slane %v1367_v60, 1  ;;  %v4873_v28 = vld [vmem:[#allocation46_spill] sm:$0xff]  ;;  %v4875_v49 = vrot.slane %v3844_v17, 1 }
 0x1a4   : > { %v1365_v40 = vmul.f32 %v1356_v7, %v3737_v26  ;;  %v1369_v27 = vmul.f32 %v4873_v28, %v3747_v42  ;;  %v4876_v42 = vrot.slane %v3850_v19, 1  ;;  %v4881_v17 = vrot.slane %v3856_v35, 2  ;;  %v1734_v19 = vld [vmem:[#allocation2 + $0x88] sm:$0x1]  ;;  %v4883_v28 = vld [vmem:[#allocation47_spill] sm:$0xff] }
 0x1a5   : > { %1268 = vrot.lane.b32.xlu0 %v4867_v14, %s3244_s23  ;;  %v1254_v52 = vrot.slane %v1238_v41, 1  ;;  %v1736_v35 = vld [vmem:[#allocation2 + $0x68] sm:$0x1] }
 0x1a6   : > { %927 = vrot.lane.b32.xlu1 %v892_v22, %s3244_s23  ;;  %v1021_v22 = vmul.f32 %v4871_v16, %v4155_v46  ;;  %v1385_v14 = vrot.slane %v1365_v40, 1  ;;  %v1391_v44 = vrot.slane %v1369_v27, 1  ;;  %v4877_v40 = vld [vmem:[#allocation52_spill] sm:$0xff]  ;;  %v4884_v27 = vrot.slane %v4883_v28, 1 }
 0x1a7   : > { %v4878_v60 = vrot.slane %v4877_v40, 2  ;;  %v1368_v40 = vmul.f32 %v1354_v51, %v3756_v9  ;;  %v4249_v51 = vpop.permute.xlu0 %1838 }
 0x1a8   : > { %v1392_v3 = vsel %vm1172_vm2, %v4875_v49, %v1391_v44  ;;  %v4885_v49 = vld [vmem:[#allocation27_spill] sm:$0xff] }
 0x1a9   : > { %1399 = vrot.lane.b32.xlu0 %v1383_v30, %s3245_s14 }
 0x1aa   : > { %1060 = vrot.lane.b32.xlu1 %v1019_v36, %s3245_s14  ;;  %v4874_v36 = vrot.slane %v3834_v33, 1  ;;  %v4879_v33 = vld [vmem:[#allocation49_spill] sm:$0xff] }
 0x1ab   : > { %v4880_v16 = vrot.slane %v4879_v33, 2  ;;  %v1389_v33 = vrot.slane %v1368_v40, 1  ;;  %v4903_v40 = vld [vmem:[#allocation28_spill] sm:$0xff] }
 0x1ac   : > { %v1388_v10 = vsel %vm1172_vm2, %v4874_v36, %v1387_v37  ;;  %v1255_v36 = vsel %vm1172_vm2, %v4884_v27, %v1254_v52  ;;  %v1735_v27 = vld [vmem:[#allocation2 + $0x40] sm:$0x1] }
 0x1ad   : > { %1403 = vrot.lane.b32.xlu0 %v1385_v14, %s3245_s14  ;;  %v1390_v9 = vsel %vm1172_vm2, %v1383_v30, %v1389_v33  ;;  %v4892_v30 = vld [vmem:[#allocation31_spill] sm:$0xff] }
 0x1ae   : > { %1064 = vrot.lane.b32.xlu1 %v1021_v22, %s3245_s14  ;;  %v1646_v22 = vsel %vm1545_vm1, %v4880_v16, %v4878_v60  ;;  %v1370_v60 = vmul.f32 %v1356_v7, %v3758_v62  ;;  %v4889_v16 = vld [vmem:[#allocation53_spill] sm:$0xff]  ;;  %v4891_v7 = vrot.slane %v3934_v4, 1  ;;  %v4896_v4 = vld [vmem:[#allocation59_spill] sm:$0xff] }
 0x1b1   : > { %1407 = vrot.lane.b32.xlu0 %v1388_v10, %s3245_s14  ;;  %v4882_v10 = vrot.slane %v3840_v23, 2 }
 0x1b2   : > { %1278 = vrot.lane.b32.xlu1 %v1254_v52, %s3244_s23 }
 0x1b3   : > { %v1650_v41 = vsel %vm1545_vm1, %v4882_v10, %v4881_v17  ;;  %v4257_v10 = vld [vmem:[#allocation2 + $0x18] sm:$0x1] }
 0x1b5   : > { %1411 = vrot.lane.b32.xlu0 %v1392_v3, %s3245_s14  ;;  %v1785_v3 = vmul.f32 %v4885_v49, %v1734_v19 }
 0x1b6   : > { %1282 = vrot.lane.b32.xlu1 %v4876_v42, %s3244_s23  ;;  %v4887_v42 = vrot.slane %v3863_v56, 2  ;;  %v1393_v56 = vrot.slane %v1370_v60, 1  ;;  %v1737_v60 = vld [vmem:[#allocation2 + $0x18] sm:$0x1] }
 0x1b7   : > { %v1820_v23 = vrot.slane %v1785_v3, 2 }
 0x1b8   : > { %v1394_v62 = vsel %vm1172_vm2, %v1385_v14, %v1393_v56  ;;  %v4264_v14 = vpop.permute.xlu0 %1415 }
 0x1b9   : > { %1669 = vrot.lane.b32.xlu0 %v1646_v22, %s3244_s23  ;;  %v1821_v52 = vsel %vm1545_vm1, %v4887_v42, %v1820_v23  ;;  %v4893_v22 = vld [vmem:[#allocation45_spill] sm:$0xff]  ;;  %4894 = vst [vmem:[#allocation21_spill] sm:$0xff] %v4264_v14 }
 0x1ba   : > { %1417 = vrot.lane.b32.xlu1 %v1387_v37, %s3245_s14  ;;  %v1626_v17 = vmul.f32 %v4893_v22, %v4892_v30 }
 0x1bc   : > { %v1655_v28 = vrot.slane %v1626_v17, 2  ;;  %v4273_v49 = vpop.permute.xlu0 %1858 }
 0x1bd   : > { %1673 = vrot.lane.b32.xlu0 %v1650_v41, %s3244_s23  ;;  %v4895_v41 = vld [vmem:[#allocation44_spill] sm:$0xff]  ;;  %4898 = vst [vmem:[#allocation24_spill] sm:$0xff] %v4273_v49 }
 0x1be   : > { %1421 = vrot.lane.b32.xlu1 %v1391_v44, %s3245_s14  ;;  %v4886_v44 = vld [vmem:[#allocation50_spill] sm:$0xff]  ;;  %v1628_v19 = vmul.f32 %v4895_v41, %v4257_v10  ;;  %v4907_v41 = vld [vmem:[#allocation56_spill] sm:$0xff] }
 0x1bf   : > { %v1787_v37 = vmul.f32 %v4886_v44, %v1736_v35  ;;  %v4901_v44 = vld [vmem:[#allocation57_spill] sm:$0xff] }
 0x1c0   : > { %v1659_v23 = vrot.slane %v1628_v19, 2  ;;  %v4908_v19 = vrot.slane %v4907_v41, 2  ;;  %v4917_v41 = vld [vmem:[#allocation60_spill] sm:$0xff] }
 0x1c1   : > { %1677 = vrot.lane.b32.xlu0 %v3897_v20, %s3244_s23  ;;  %v1824_v20 = vrot.slane %v1787_v37, 2  ;;  %v4902_v37 = vld [vmem:[#allocation48_spill] sm:$0xff] }
 0x1c2   : > { %1270 = vrot.lane.b32.xlu1 %v1255_v36, %s3244_s23  ;;  %v1786_v42 = vmul.f32 %v4902_v37, %v1735_v27 }
 0x1c5   : > { %1681 = vrot.lane.b32.xlu0 %v3909_v15, %s3244_s23 }
 0x1c6   : > { %1274 = vrot.lane.b32.xlu1 %v3904_v58, %s3244_s23  ;;  %v4888_v58 = vrot.slane %v3867_v24, 2  ;;  %v4247_v24 = vpop.permute.xlu1 %1405 }
 0x1c8   : > { %v1825_v15 = vsel %vm1545_vm1, %v4888_v58, %v1824_v20 }
 0x1c9   : > { %1850 = vrot.lane.b32.xlu0 %v1821_v52, %s3245_s14  ;;  %v4282_v52 = vld [vmem:[#allocation2] sm:$0xff] }
 0x1ca   : > { %1840 = vrot.lane.b32.xlu1 %v3914_v55, %s3245_s14  ;;  %v4890_v55 = vrot.slane %v3930_v18, 1  ;;  %v4262_v18 = vpop.permute.xlu1 %1425  ;;  %v855_v20 = vmul.f32 %v4282_v52, %v4903_v40 }
 0x1cd   : > { %1854 = vrot.lane.b32.xlu0 %v1825_v15, %s3245_s14 }
 0x1ce   : > { %1844 = vrot.lane.b32.xlu1 %v4889_v16, %s3245_s14  ;;  %v4271_v36 = vpop.permute.xlu1 %1848  ;;  %v4904_v16 = vld [vmem:[#allocation55_spill] sm:$0xff] }
 0x1cf   : > { %4897 = vst [vmem:[#allocation18_spill] sm:$0xff] %v4271_v36 }
 0x1d1   : > { %1280 = vrot.lane.b32.xlu0 %v4890_v55, %s3244_s23  ;;  %v4906_v55 = vld [vmem:[#allocation51_spill] sm:$0xff] }
 0x1d2   : > { %1409 = vrot.lane.b32.xlu1 %v1390_v9, %s3245_s14  ;;  %v4905_v9 = vrot.slane %v4904_v16, 2  ;;  %v4309_v16 = vld [vmem:[#allocation9 + $0x30] sm:$0xf] }
 0x1d3   : > { %4915 = vst [vmem:[#allocation23_spill] sm:$0xff] %v4309_v16 }
 0x1d5   : > { %1284 = vrot.lane.b32.xlu0 %v4891_v7, %s3244_s23  ;;  %v1822_v7 = vrot.slane %v1786_v42, 2 }
 0x1d6   : > { %1413 = vrot.lane.b32.xlu1 %v1394_v62, %s3245_s14  ;;  %v1788_v62 = vmul.f32 %v4906_v55, %v1737_v60 }
 0x1d9   : > { %1419 = vrot.lane.b32.xlu0 %v1389_v33, %s3245_s14 }
 0x1da   : > { %1671 = vrot.lane.b32.xlu1 %v3975_v31, %s3244_s23  ;;  %v4899_v31 = vld [vmem:[#allocation54_spill] sm:$0xff] }
 0x1db   : > { %v4900_v3 = vrot.slane %v4899_v31, 2  ;;  %v1826_v31 = vrot.slane %v1788_v62, 2 }
 0x1dd   : > { %1423 = vrot.lane.b32.xlu0 %v1393_v56, %s3245_s14  ;;  %v1656_v35 = vsel %vm1545_vm1, %v4900_v3, %v1655_v28  ;;  %v1660_v56 = vsel %vm1545_vm1, %v4905_v9, %v1659_v23  ;;  %v1823_v28 = vsel %vm1545_vm1, %v4908_v19, %v1822_v7  ;;  %v4910_v3 = vld [vmem:[#allocation41_spill] sm:$0xff]  ;;  %v4916_v9 = vld [vmem:[#allocation16_spill] sm:$0xff]  ;;  %v4320_v19 = vld [vmem:[#allocation9 + $0x38] sm:$0xf] }
 0x1de   : > { %1675 = vrot.lane.b32.xlu1 %v4896_v4, %s3244_s23  ;;  %v4909_v4 = vld [vmem:[#allocation35_spill] sm:$0xff]  ;;  %4918 = vst [vmem:[#allocation19_spill] sm:$0xff] %v4320_v19 }
 0x1e1   : > { %1272 = vrot.lane.b32.xlu0 %v4901_v44, %s3244_s23  ;;  %v4912_v44 = vld [vmem:[#allocation36_spill] sm:$0xff] }
 0x1e2   : > { %1679 = vrot.lane.b32.xlu1 %v1656_v35, %s3244_s23  ;;  %v4911_v35 = vld [vmem:[#allocation34_spill] sm:$0xff]  ;;  %v857_v37 = vmul.f32 %v4912_v44, %v3735_v63 }
 0x1e3   : > { %v1049_v58 = vpop.permute.xlu1 %1048  ;;  %v914_v15 = vpop.permute.xlu0 %913  ;;  %v856_v23 = vmul.f32 %v4911_v35, %v4910_v3 }
 0x1e4   : > { %v958_v33 = vadd.f32 %v914_v15, %v855_v20  ;;  %v4913_v20 = vld [vmem:[#allocation58_spill] sm:$0xff] }
 0x1e5   : > { %1276 = vrot.lane.b32.xlu0 %v3992_v61, %s3244_s23  ;;  %v4914_v60 = vrot.slane %v4913_v20, 2  ;;  %v4920_v20 = vld [vmem:[#allocation42_spill] sm:$0xff] }
 0x1e6   : > { %1683 = vrot.lane.b32.xlu1 %v1660_v56, %s3244_s23  ;;  %v1101_v30 = vadd.f32 %v1049_v58, %v958_v33  ;;  %v1913_v56 = vrot.slane %v4309_v16, %v4916_v9 }
 0x1e7   : > { %v1053_v22 = vpop.permute.xlu1 %1052  ;;  %v918_v17 = vpop.permute.xlu0 %917  ;;  %v1827_v33 = vsel %vm1545_vm1, %v4914_v60, %v1826_v31 }
 0x1e8   : > { %v4297_v27 = vadd.f32 %v4909_v4, %v1101_v30 }
 0x1e9   : > { %1842 = vrot.lane.b32.xlu0 %v3999_v59, %s3245_s14 }
 0x1ea   : > { %1852 = vrot.lane.b32.xlu1 %v1823_v28, %s3245_s14  ;;  %v1917_v28 = vrot.slane %v4320_v19, %v4916_v9 }
 0x1eb   : > { %v916_v61 = vpop.permute.xlu1 %915  ;;  %v1051_v42 = vpop.permute.xlu0 %1050 }
 0x1ec   : > { %v932_v59 = vsel %vm841_vm3, %v914_v15, %v916_v61  ;;  %v933_v55 = vsel %vm841_vm3, %v916_v61, %v918_v17  ;;  %v1073_v62 = vsel %vm1068_vm4, %v1049_v58, %v1051_v42  ;;  %v1074_v7 = vsel %vm1068_vm4, %v1051_v42, %v1053_v22  ;;  %v4919_v15 = vld [vmem:[#allocation29_spill] sm:$0xff] }
 0x1ed   : > { %v959_v30 = vadd.f32 %v932_v59, %v856_v23  ;;  %v960_v63 = vadd.f32 %v933_v55, %v857_v37  ;;  %1846 = vrot.lane.b32.xlu0 %v4917_v41, %s3245_s14  ;;  %v859_v31 = vmul.f32 %v4919_v15, %v3737_v26  ;;  %v4921_v42 = vld [vmem:[#allocation37_spill] sm:$0xff]  ;;  %v4922_v55 = vld [vmem:[#allocation39_spill] sm:$0xff] }
 0x1ee   : > { %1856 = vrot.lane.b32.xlu1 %v1827_v33, %s3245_s14  ;;  %v858_v23 = vmul.f32 %v4921_v42, %v4920_v20 }
 0x1ef   : > { %v1102_v61 = vadd.f32 %v1073_v62, %v959_v30  ;;  %v1103_v3 = vadd.f32 %v1074_v7, %v960_v63  ;;  %v920_v58 = vpop.permute.xlu1 %919  ;;  %v1055_v37 = vpop.permute.xlu0 %1054 }
 0x1f0   : > { %v934_v60 = vsel %vm841_vm3, %v918_v17, %v920_v58  ;;  %v962_v33 = vadd.f32 %v920_v58, %v859_v31  ;;  %v1075_v59 = vsel %vm1068_vm4, %v1053_v22, %v1055_v37  ;;  %v1076_v41 = vsel %vm1068_vm4, %v1055_v37, %v4922_v55  ;;  %v4925_v22 = vld [vmem:[#allocation38_spill] sm:$0xff] }
 0x1f1   : > { %v961_v16 = vadd.f32 %v934_v60, %v858_v23  ;;  %1928 = vrot.lane.b32.xlu0 %v1917_v28, %s3244_s23  ;;  %v4335_v26 = vadd.f32 %v4079_v45, %v1102_v61  ;;  %v4338_v9 = vadd.f32 %v4089_v8, %v1103_v3  ;;  %v4928_v8 = vld [vmem:[#allocation30_spill] sm:$0xff] }
 0x1f2   : > { %1926 = vrot.lane.b32.xlu1 %v1913_v56, %s3244_s23  ;;  %v1105_v62 = vadd.f32 %v1076_v41, %v962_v33  ;;  %v1469_v56 = vld [vmem:[#allocation2 + $0x98] sm:$0xfe]  ;;  %v3004_v41 = vld [vmem:[#allocation8 + $0x60] ss:$8 sps:$4 sm:$0xff]  }
 0x1f3   : > { %4923 = vst [vmem:[#allocation26_spill] sm:$0xff] %v4335_v26  ;;  %4924 = vst [vmem:[#allocation25_spill] sm:$0xff] %v4338_v9  ;;  %v1104_v7 = vadd.f32 %v1075_v59, %v961_v16  ;;  %v4340_v17 = vpop.permute.xlu1 %1262  ;;  %v1662_v30 = vpop.permute.xlu0 %1661  ;;  %v4353_v3 = vmul.f32 %v4928_v8, %v1469_v56  ;;  %v3001_v37 = vld [vmem:[#allocation8 + $0x70] ss:$8 sps:$4 sm:$0xff]  }
 0x1f4   : > { %v1310_v63 = vadd.f32 %v4340_v17, %v4925_v22  ;;  %v4345_v31 = vadd.f32 %v4105_v50, %v1105_v62  ;;  %v3003_v50 = vld [vmem:[#allocation8 + $0x74] ss:$8 sps:$4 sm:$0xff]  }
 0x1f5   : > { %v4348_v28 = vadd.f32 %v4100_v6, %v1104_v7  ;;  %v4777_v20 = vrot.slane %v4353_v3, 2  ;;  %v3006_v6 = vld [vmem:[#allocation8 + $0x64] ss:$8 sps:$4 sm:$0xff]   ;;  %2237 = vmatprep.subr.bf16.mxu0 %v3003_v50  ;;  %2542 = vmatprep.subr.bf16.mxu1 %v3003_v50  ;;  %v3009_v62 = vld [vmem:[#allocation8 + $0x54] ss:$8 sps:$4 sm:$0xff]  }
 0x1f6   : > { %4926 = vst [vmem:[#allocation20_spill] sm:$0xff] %v4345_v31  ;;  %2238 = vmatpush1.bf16.msra.mxu0 %v3001_v37  ;;  %2543 = vmatpush1.bf16.msra.mxu1 %v3001_v37  ;;  %v808_v50 = vld [vmem:[#allocation2 + $0xb0] sm:$0x7f]  ;;  %v3012_v37 = vld [vmem:[#allocation8 + $0x44] ss:$8 sps:$4 sm:$0xff]  }
 0x1f7   : > { %4927 = vst [vmem:[#allocation22_spill] sm:$0xff] %v4348_v28  ;;  %v4350_v45 = vpop.permute.xlu1 %1266  ;;  %v1666_v61 = vpop.permute.xlu0 %1665  ;;  %2239 = vmatprep.subr.bf16.mxu0 %v3006_v6  ;;  %2544 = vmatprep.subr.bf16.mxu1 %v3006_v6 }
 0x1fa   : > { %2240 = vmatpush1.bf16.msra.mxu0 %v3004_v41  ;;  %2545 = vmatpush1.bf16.msra.mxu1 %v3004_v41 }
 0x1fb   : > { %v4355_v16 = vpop.permute.xlu1 %1397  ;;  %v1831_v58 = vpop.permute.xlu0 %1830  ;;  %2241 = vmatprep.subr.bf16.mxu0 %v3009_v62  ;;  %2546 = vmatprep.subr.bf16.mxu1 %v3009_v62 }
 0x1fc   : > { %v1454_v23 = vadd.f32 %v4355_v16, %v1310_v63 }
 0x1fe   : > { %v1586_v60 = vadd.f32 %v4777_v20, %v1454_v23  ;;  %v3007_v20 = vld [vmem:[#allocation8 + $0x50] ss:$8 sps:$4 sm:$0xff]  }
 0x1ff   : > { %v1835_v59 = vpop.permute.xlu0 %1834  ;;  %2242 = vmatpush1.bf16.msra.mxu0 %v3007_v20  ;;  %2547 = vmatpush1.bf16.msra.mxu1 %v3007_v20 }
 0x200   : > { %v4361_v33 = vpop.permute.xlu1 %1401  ;;  %v1709_v55 = vadd.f32 %v1662_v30, %v1586_v60  ;;  %2243 = vmatprep.subr.bf16.mxu0 %v3012_v37  ;;  %2548 = vmatprep.subr.bf16.mxu1 %v3012_v37 }
 0x202   : > { %v4363_v7 = vadd.f32 %v1831_v58, %v1709_v55  ;;  %v860_v55 = vmul.f32 %v4903_v40, %v808_v50  ;;  %v3013_v50 = vld [vmem:[#allocation8 + $0x30] ss:$8 sps:$4 sm:$0xff]  }
 0x203   : > { %v922_v63 = vpop.permute.xlu0 %921 }
 0x204   : > { %v1664_v22 = vpop.permute.xlu1 %1663  ;;  %v963_v36 = vadd.f32 %v922_v63, %v860_v55 }
 0x205   : > { %v4366_v56 = vsel %vm841_vm3, %v1662_v30, %v1664_v22  ;;  %v4369_v23 = vsel %vm841_vm3, %v1664_v22, %v1666_v61  ;;  %v3010_v30 = vld [vmem:[#allocation8 + $0x40] ss:$8 sps:$4 sm:$0xff]   ;;  %v3015_v22 = vld [vmem:[#allocation8 + $0x34] ss:$8 sps:$4 sm:$0xff]  }
 0x206   : > { %2244 = vmatpush1.bf16.msra.mxu0 %v3010_v30  ;;  %2549 = vmatpush1.bf16.msra.mxu1 %v3010_v30 }
 0x207   : > { %v926_v6 = vpop.permute.xlu0 %925  ;;  %2245 = vmatprep.subr.bf16.mxu0 %v3015_v22  ;;  %2550 = vmatprep.subr.bf16.mxu1 %v3015_v22  ;;  %v862_v22 = vmul.f32 %v4912_v44, %v4147_v13  ;;  %v3024_v13 = vld [vmem:[#allocation8 + $0x4] ss:$8 sps:$4 sm:$0xff]   ;;  %v864_v44 = vmul.f32 %v4919_v15, %v4155_v46  ;;  %v3027_v15 = vld [vmem:[#allocation8 + $0xf4] ss:$8 sps:$4 sm:$0xff]  }
 0x208   : > { %v4371_v60 = vpop.permute.xlu1 %1667 }
 0x209   : > { %v4376_v19 = vsel %vm841_vm3, %v1666_v61, %v4371_v60  ;;  %v3018_v61 = vld [vmem:[#allocation8 + $0x24] ss:$8 sps:$4 sm:$0xff]  }
 0x20a   : > { %2246 = vmatpush1.bf16.msra.mxu0 %v3013_v50  ;;  %2551 = vmatpush1.bf16.msra.mxu1 %v3013_v50 }
 0x20b   : > { %v1059_v49 = vpop.permute.xlu0 %1058  ;;  %2247 = vmatprep.subr.bf16.mxu0 %v3018_v61  ;;  %2552 = vmatprep.subr.bf16.mxu1 %v3018_v61  ;;  %v3019_v61 = vld [vmem:[#allocation8 + $0x10] ss:$8 sps:$4 sm:$0xff]  }
 0x20c   : > { %v1833_v41 = vpop.permute.xlu1 %1832  ;;  %v1106_v40 = vadd.f32 %v1059_v49, %v963_v36  ;;  %v3021_v36 = vld [vmem:[#allocation8 + $0x14] ss:$8 sps:$4 sm:$0xff]  }
 0x20d   : > { %v4379_v62 = vsel %vm1068_vm4, %v1831_v58, %v1833_v41  ;;  %v4382_v28 = vsel %vm1068_vm4, %v1833_v41, %v1835_v59  ;;  %v3016_v41 = vld [vmem:[#allocation8 + $0x20] ss:$8 sps:$4 sm:$0xff]  }
 0x20e   : > { %v4385_v20 = vadd.f32 %v4909_v4, %v1106_v40  ;;  %v861_v4 = vmul.f32 %v4911_v35, %v3985_v54  ;;  %2248 = vmatpush1.bf16.msra.mxu0 %v3016_v41  ;;  %2553 = vmatpush1.bf16.msra.mxu1 %v3016_v41 }
 0x20f   : > { %v4389_v37 = vpop.permute.xlu0 %1062  ;;  %2249 = vmatprep.subr.bf16.mxu0 %v3021_v36  ;;  %2554 = vmatprep.subr.bf16.mxu1 %v3021_v36 }
 0x210   : > { %v4387_v55 = vpop.permute.xlu1 %1836 }
 0x211   : > { %v4393_v58 = vsel %vm1068_vm4, %v1835_v59, %v4387_v55 }
 0x212   : > { %2250 = vmatpush1.bf16.msra.mxu0 %v3019_v61  ;;  %2555 = vmatpush1.bf16.msra.mxu1 %v3019_v61  ;;  %v3030_v61 = vld [vmem:[#allocation8 + $0xe4] ss:$8 sps:$4 sm:$0xff]  }
 0x213   : > { %v1265_v40 = vpop.permute.xlu0 %1264  ;;  %2251 = vmatprep.subr.bf16.mxu0 %v3024_v13  ;;  %2556 = vmatprep.subr.bf16.mxu1 %v3024_v13 }
 0x214   : > { %v924_v30 = vpop.permute.xlu1 %923  ;;  %v1286_v59 = vsel %vm841_vm3, %v4340_v17, %v1265_v40  ;;  %v1287_v50 = vsel %vm841_vm3, %v1265_v40, %v4350_v45  ;;  %v863_v17 = vmul.f32 %v4921_v42, %v4005_v0 }
 0x215   : > { %v935_v14 = vsel %vm841_vm3, %v922_v63, %v924_v30  ;;  %v936_v31 = vsel %vm841_vm3, %v924_v30, %v926_v6  ;;  %v1311_v54 = vadd.f32 %v1286_v59, %v4053_v32  ;;  %v1312_v35 = vadd.f32 %v1287_v50, %v4056_v48 }
 0x216   : > { %v964_v9 = vadd.f32 %v935_v14, %v861_v4  ;;  %v965_v26 = vadd.f32 %v936_v31, %v862_v22  ;;  %v3022_v31 = vld [vmem:[#allocation8] ss:$8 sps:$4 sm:$0xff]   ;;  %v3025_v4 = vld [vmem:[#allocation8 + $0xf0] ss:$8 sps:$4 sm:$0xff]  }
 0x217   : > { %v1269_v30 = vpop.permute.xlu0 %1268  ;;  %2252 = vmatpush1.bf16.msra.mxu0 %v3022_v31  ;;  %2557 = vmatpush1.bf16.msra.mxu1 %v3022_v31 }
 0x218   : > { %v928_v63 = vpop.permute.xlu1 %927  ;;  %v1288_v32 = vsel %vm841_vm3, %v4350_v45, %v1269_v30  ;;  %v1314_v48 = vadd.f32 %v1269_v30, %v4067_v47  ;;  %2253 = vmatprep.subr.bf16.mxu0 %v3027_v15  ;;  %2558 = vmatprep.subr.bf16.mxu1 %v3027_v15  ;;  %v4931_v30 = vrot.slane %v4041_v11, 1  ;;  %v3028_v11 = vld [vmem:[#allocation8 + $0xe0] ss:$8 sps:$4 sm:$0xff]  }
 0x219   : > { %v937_v40 = vsel %vm841_vm3, %v926_v6, %v928_v63  ;;  %v967_v14 = vadd.f32 %v928_v63, %v864_v44  ;;  %v1313_v46 = vadd.f32 %v1288_v32, %v4064_v1  ;;  %v4930_v44 = vrot.slane %v3793_v38, 2 }
 0x21a   : > { %v966_v41 = vadd.f32 %v937_v40, %v863_v17 }
 0x21b   : > { %v1400_v0 = vpop.permute.xlu0 %1399  ;;  %2254 = vmatpush2.bf16.msra.mxu0 %v3025_v4  ;;  %2559 = vmatpush2.bf16.msra.mxu1 %v3025_v4 }
 0x21c   : > { %v1061_v36 = vpop.permute.xlu1 %1060  ;;  %v1427_v45 = vsel %vm1068_vm4, %v4355_v16, %v1400_v0  ;;  %v1428_v47 = vsel %vm1068_vm4, %v1400_v0, %v4361_v33  ;;  %v3033_v0 = vld [vmem:[#allocation8 + $0xd4] ss:$8 sps:$4 sm:$0xff]   ;;  %2255 = vmatprep.subr.bf16.mxu0 %v3030_v61  ;;  %2560 = vmatprep.subr.bf16.mxu1 %v3030_v61  ;;  %v3034_v61 = vld [vmem:[#allocation8 + $0xc0] ss:$8 sps:$4 sm:$0xff]  }
 0x21d   : > { %v1077_v42 = vsel %vm1068_vm4, %v1059_v49, %v1061_v36  ;;  %v1078_v6 = vsel %vm1068_vm4, %v1061_v36, %v4389_v37  ;;  %v1455_v59 = vadd.f32 %v1427_v45, %v1311_v54  ;;  %v1456_v50 = vadd.f32 %v1428_v47, %v1312_v35  ;;  %v4933_v35 = vld [vmem:[#allocation40_spill] sm:$0xff] }
 0x21e   : > { %v1107_v1 = vadd.f32 %v1077_v42, %v964_v9  ;;  %v1108_v22 = vadd.f32 %v1078_v6, %v965_v26  ;;  %v4929_v49 = vrot.slane %v3776_v53, 2  ;;  %v4932_v26 = vrot.slane %v4047_v43, 1 }
 0x21f   : > { %v1588_v63 = vadd.f32 %v4930_v44, %v1456_v50  ;;  %v1404_v17 = vpop.permute.xlu0 %1403  ;;  %2256 = vmatpush2.bf16.msra.mxu0 %v3028_v11  ;;  %2561 = vmatpush2.bf16.msra.mxu1 %v3028_v11  ;;  %v3037_v44 = vld [vmem:[#allocation8 + $0xb0] ss:$8 sps:$4 sm:$0xff]  }
 0x220   : > { %v1587_v13 = vadd.f32 %v4929_v49, %v1455_v59  ;;  %v1065_v16 = vpop.permute.xlu1 %1064  ;;  %v4429_v40 = vadd.f32 %v4931_v30, %v1107_v1  ;;  %v4433_v9 = vadd.f32 %v4932_v26, %v1108_v22  ;;  %v1429_v38 = vsel %vm1068_vm4, %v4361_v33, %v1404_v17  ;;  %2257 = vmatprep.subr.bf16.mxu0 %v3033_v0  ;;  %v3040_v26 = vld [vmem:[#allocation8 + $0xa0] ss:$8 sps:$4 sm:$0xff]  }
 0x221   : > { %v1079_v54 = vsel %vm1068_vm4, %v4389_v37, %v1065_v16  ;;  %v1080_v53 = vsel %vm1068_vm4, %v1065_v16, %v4933_v35  ;;  %v1430_v32 = vsel %vm1068_vm4, %v1404_v17, %v4247_v24  ;;  %v1711_v43 = vadd.f32 %v4369_v23, %v1588_v63  ;;  %v1474_v37 = vld [vmem:[#allocation2 + $0xa0] sm:$0x1]  ;;  %2562 = vmatprep.subr.bf16.mxu1 %v3033_v0  ;;  %v3042_v63 = vld [vmem:[#allocation8 + $0xa4] ss:$8 sps:$4 sm:$0xff]  }
 0x222   : > { %v1710_v31 = vadd.f32 %v4366_v56, %v1587_v13  ;;  %v1109_v15 = vadd.f32 %v1079_v54, %v966_v41  ;;  %v1110_v36 = vadd.f32 %v1080_v53, %v967_v14  ;;  %v1457_v42 = vadd.f32 %v1429_v38, %v1313_v46 }
 0x223   : > { %v1458_v6 = vadd.f32 %v1430_v32, %v1314_v48  ;;  %v4450_v24 = vpop.permute.xlu0 %1407  ;;  %v4934_v56 = vrot.slane %v4050_v2, 1  ;;  %v4935_v23 = vrot.slane %v4061_v5, 1  ;;  %v4461_v41 = vadd.f32 %v4382_v28, %v1711_v43  ;;  %v3031_v2 = vld [vmem:[#allocation8 + $0xd0] ss:$8 sps:$4 sm:$0xff]   ;;  %v3036_v28 = vld [vmem:[#allocation8 + $0xc4] ss:$8 sps:$4 sm:$0xff]  }
 0x224   : > { %v4446_v33 = vadd.f32 %v4379_v62, %v1710_v31  ;;  %v4448_v45 = vpop.permute.xlu1 %1278  ;;  %v4936_v48 = vrot.slane %v3770_v21, 2  ;;  %v4937_v62 = vrot.slane %v4026_v29, 2  ;;  %v1520_v22 = vmul.f32 %v4282_v52, %v4928_v8  ;;  %2258 = vmatpush2.bf16.msra.mxu0 %v3031_v2  ;;  %2563 = vmatpush2.bf16.msra.mxu1 %v3031_v2 }
 0x225   : > { %v4454_v47 = vadd.f32 %v4934_v56, %v1109_v15  ;;  %v4458_v14 = vadd.f32 %v4935_v23, %v1110_v36  ;;  %v1320_v1 = vadd.f32 %v4448_v45, %v4385_v20  ;;  %v1525_v5 = vmul.f32 %v4928_v8, %v1474_v37  ;;  %2259 = vmatprep.subr.bf16.mxu0 %v3036_v28 }
 0x226   : > { %v1589_v46 = vadd.f32 %v4936_v48, %v1457_v42  ;;  %v1590_v4 = vadd.f32 %v4937_v62, %v1458_v6  ;;  %v1863_v29 = vsel %vm1068_vm4, %v4387_v55, %v4249_v51  ;;  %v1551_v49 = vrot.slane %v1520_v22, 2  ;;  %2564 = vmatprep.subr.bf16.mxu1 %v3036_v28  ;;  %v4939_v42 = vld [vmem:[#allocation33_spill] sm:$0xff] }
 0x227   : > { %v4479_v50 = vpop.permute.xlu0 %1411  ;;  %v4938_v31 = vrot.slane %v4353_v3, 2  ;;  %v1938_v6 = vadd.f32 %v4939_v42, %v4363_v7 }
 0x228   : > { %v1712_v59 = vadd.f32 %v4376_v19, %v1589_v46  ;;  %v1713_v21 = vadd.f32 %v4371_v60, %v1590_v4  ;;  %v4477_v20 = vpop.permute.xlu1 %1282  ;;  %v1561_v19 = vrot.slane %v1525_v5, 2  ;;  %v3039_v60 = vld [vmem:[#allocation8 + $0xb4] ss:$8 sps:$4 sm:$0xff]   ;;  %2260 = vmatpush2.bf16.msra.mxu0 %v3034_v61  ;;  %2565 = vmatpush2.bf16.msra.mxu1 %v3034_v61 }
 0x229   : > { %2261 = vmatprep.subr.bf16.mxu0 %v3039_v60  ;;  %2566 = vmatprep.subr.bf16.mxu1 %v3039_v60  ;;  %v1552_v43 = vsel %vm1545_vm1, %v4938_v31, %v1551_v49  ;;  %v1953_v4 = vmax.f32 %v1938_v6, 0.0 }
 0x22a   : > { %v4482_v52 = vadd.f32 %v4393_v58, %v1712_v59  ;;  %v4484_v8 = vadd.f32 %v1863_v29, %v1713_v21  ;;  %v1562_v58 = vsel %vm1545_vm1, %v1551_v49, %v1561_v19 }
 0x22b   : > { %v4488_v51 = vpop.permute.xlu0 %1669 }
 0x22c   : > { %v4486_v13 = vpop.permute.xlu1 %1417  ;;  %2262 = vmatpush2.bf16.msra.mxu0 %v3037_v44  ;;  %2567 = vmatpush2.bf16.msra.mxu1 %v3037_v44 }
 0x22d   : > { %v1464_v55 = vadd.f32 %v4486_v13, %v1320_v1  ;;  %2263 = vmatprep.subr.bf16.mxu0 %v3042_v63  ;;  %2568 = vmatprep.subr.bf16.mxu1 %v3042_v63 }
 0x22f   : > { %v1596_v16 = vadd.f32 %v1562_v58, %v1464_v55  ;;  %v4494_v30 = vpop.permute.xlu0 %1673 }
 0x230   : > { %v4492_v17 = vpop.permute.xlu1 %1421  ;;  %2264 = vmatpush2.bf16.msra.mxu0 %v3040_v26  ;;  %2569 = vmatpush2.bf16.msra.mxu1 %v3040_v26 }
 0x233   : > { %v4498_v35 = vpop.permute.xlu0 %1677 }
 0x234   : > { %v4496_v54 = vpop.permute.xlu1 %1270  ;;  %v1719_v36 = vadd.f32 %v4498_v35, %v1596_v16 }
 0x235   : > { %v1315_v53 = vadd.f32 %v4496_v54, %v4297_v27 }
 0x237   : > { %v1459_v38 = vadd.f32 %v4450_v24, %v1315_v53  ;;  %v4505_v11 = vpop.permute.xlu0 %1681 }
 0x238   : > { %v4503_v32 = vpop.permute.xlu1 %1274 }
 0x239   : > { %v1591_v15 = vadd.f32 %v1552_v43, %v1459_v38  ;;  %v1529_v38 = vmul.f32 %v3659_v25, %v4257_v10 }
 0x23b   : > { %v1714_v0 = vadd.f32 %v4488_v51, %v1591_v15  ;;  %v4514_v27 = vpop.permute.xlu0 %1850  ;;  %v1569_v10 = vrot.slane %v1529_v38, 2  ;;  %v4945_v38 = vld [vmem:[#allocation21_spill] sm:$0xff] }
 0x23c   : > { %v4512_v37 = vpop.permute.xlu1 %1840  ;;  %v1897_v23 = vadd.f32 %v4514_v27, %v1719_v36 }
 0x23d   : > { %v1892_v56 = vadd.f32 %v4512_v37, %v1714_v0 }
 0x23e   : > { %v1948_v48 = vadd.f32 %v4939_v42, %v1897_v23 }
 0x23f   : > { %v1943_v3 = vadd.f32 %v4939_v42, %v1892_v56  ;;  %v4524_v62 = vpop.permute.xlu0 %1854 }
 0x240   : > { %v4522_v46 = vpop.permute.xlu1 %1844  ;;  %v1963_v2 = vmax.f32 %v1948_v48, 0.0 }
 0x241   : > { %v1958_v1 = vmax.f32 %v1943_v3, 0.0 }
 0x242   : > { %v1971_v5 = vpack.c.bf16 %v1963_v2, %v1963_v2 }
 0x243   : > { %v1968_v22 = vpack.c.bf16 %v1958_v1, %v1953_v4  ;;  %v1281_v59 = vpop.permute.xlu0 %1280 }
 0x244   : > { %v1410_v28 = vpop.permute.xlu1 %1409  ;;  %v2024_v29 = vshrl.u32 %v1971_v5, 16  ;;  %v2027_v61 = vshll.u32 %v1971_v5, 16  ;;  %v1292_v63 = vsel %vm841_vm3, %v4448_v45, %v1281_v59  ;;  %v1293_v16 = vsel %vm841_vm3, %v1281_v59, %v4477_v20 }
 0x245   : > { %v2016_v7 = vshrl.u32 %v1968_v22, 16  ;;  %v2019_v21 = vshll.u32 %v1968_v22, 16  ;;  %v1321_v31 = vadd.f32 %v1292_v63, %v4429_v40  ;;  %v1322_v43 = vadd.f32 %v1293_v16, %v4433_v9 }
 0x246   : > { %v2026_v60 = vrot.slane %v2024_v29, 3  ;;  %v2029_v55 = vrot.slane %v2027_v61, 4  ;;  %v4940_v5 = vrot.slane %v4095_v34, 2 }
 0x247   : > { %v2018_v49 = vrot.slane %v2016_v7, 3  ;;  %v2021_v19 = vrot.slane %v2019_v21, 4  ;;  %v1285_v58 = vpop.permute.xlu0 %1284 }
 0x248   : > { %v1414_v44 = vpop.permute.xlu1 %1413  ;;  %v2030_v53 = vor.u32 %v2029_v55, %v2026_v60  ;;  %v1294_v45 = vsel %vm841_vm3, %v4477_v20, %v1285_v58  ;;  %v1324_v9 = vadd.f32 %v1285_v58, %v4458_v14 }
 0x249   : > { %v2022_v26 = vor.u32 %v2021_v19, %v2018_v49  ;;  %v1323_v40 = vadd.f32 %v1294_v45, %v4454_v47  ;;  %v1570_v47 = vsel %vm1545_vm1, %v4940_v5, %v1569_v10  ;;  %v4943_v49 = vld [vmem:[#allocation32_spill] sm:$0xff]  ;;  %v1431_v19 = vsel %vm1068_vm4, %v4450_v24, %v1410_v28 }
 0x24a   : > { %v1930_v34 = vsel %vm841_vm3, %v4939_v42, %v4943_v49  ;;  %v1433_v16 = vsel %vm1068_vm4, %v4479_v50, %v1414_v44 }
 0x24b   : > { %v1420_v36 = vpop.permute.xlu0 %1419  ;;  %v4535_v0 = vsel %vm2014_vm5, %v2022_v26, %v2030_v53  ;;  %v1939_v63 = vadd.f32 %v1930_v34, %v4446_v33  ;;  %v4944_v53 = vld [vmem:[#allocation20_spill] sm:$0xff] }
 0x24c   : > { %v1672_v15 = vpop.permute.xlu1 %1671  ;;  %v1435_v6 = vsel %vm1068_vm4, %v4486_v13, %v1420_v36  ;;  %v1436_v56 = vsel %vm1068_vm4, %v1420_v36, %v4492_v17  ;;  %v4947_v36 = vld [vmem:[#allocation61_spill] sm:$0xff] }
 0x24d   : > { %v1465_v23 = vadd.f32 %v1435_v6, %v1321_v31  ;;  %v1466_v25 = vadd.f32 %v1436_v56, %v1322_v43  ;;  %v4946_v31 = vld [vmem:[#allocation22_spill] sm:$0xff] }
 0x24e   : > { %v4948_v6 = vld [vmem:[#allocation62_spill] sm:$0xff] }
 0x24f   : > { %v1424_v48 = vpop.permute.xlu0 %1423  ;;  %v1597_v4 = vadd.f32 %v4111_v12, %v1465_v23  ;;  %v1598_v1 = vadd.f32 %v4114_v39, %v1466_v25 }
 0x250   : > { %v1676_v3 = vpop.permute.xlu1 %1675  ;;  %v1437_v20 = vsel %vm1068_vm4, %v4492_v17, %v1424_v48  ;;  %v1438_v13 = vsel %vm1068_vm4, %v1424_v48, %v4262_v18  ;;  %v4941_v17 = vld [vmem:[#allocation26_spill] sm:$0xff]  ;;  %v4942_v18 = vld [vmem:[#allocation25_spill] sm:$0xff] }
 0x251   : > { %v1467_v2 = vadd.f32 %v1437_v20, %v1323_v40  ;;  %v1468_v22 = vadd.f32 %v1438_v13, %v1324_v9  ;;  %v1690_v48 = vsel %vm841_vm3, %v4494_v30, %v1676_v3  ;;  %v4949_v20 = vld [vmem:[#allocation63_spill] sm:$0xff] }
 0x253   : > { %v1273_v14 = vpop.permute.xlu0 %1272  ;;  %v1599_v7 = vadd.f32 %v4131_v57, %v1467_v2  ;;  %v1600_v21 = vadd.f32 %v1570_v47, %v1468_v22  ;;  %v1432_v57 = vsel %vm1068_vm4, %v1410_v28, %v4479_v50  ;;  %v1434_v28 = vsel %vm1068_vm4, %v1414_v44, %v4945_v38 }
 0x254   : > { %v1680_v59 = vpop.permute.xlu1 %1679  ;;  %v1289_v12 = vsel %vm841_vm3, %v4496_v54, %v1273_v14  ;;  %v1290_v39 = vsel %vm841_vm3, %v1273_v14, %v4503_v32  ;;  %v1688_v50 = vsel %vm841_vm3, %v4488_v51, %v1672_v15  ;;  %v4950_v14 = vld [vmem:[#allocation64_spill] sm:$0xff] }
 0x255   : > { %v1316_v29 = vadd.f32 %v1289_v12, %v4941_v17  ;;  %v1317_v61 = vadd.f32 %v1290_v39, %v4942_v18  ;;  %v1691_v26 = vsel %vm841_vm3, %v4498_v35, %v1680_v59  ;;  %v1689_v35 = vsel %vm841_vm3, %v1672_v15, %v4494_v30 }
 0x256   : > { %v1720_v23 = vadd.f32 %v1691_v26, %v1597_v4 }
 0x257   : > { %v1460_v60 = vadd.f32 %v1431_v19, %v1316_v29  ;;  %v1461_v55 = vadd.f32 %v1432_v57, %v1317_v61  ;;  %v1277_v58 = vpop.permute.xlu0 %1276  ;;  %v1954_v57 = vmax.f32 %v1939_v63, 0.0 }
 0x258   : > { %v1684_v54 = vpop.permute.xlu1 %1683  ;;  %v1291_v42 = vsel %vm841_vm3, %v4503_v32, %v1277_v58  ;;  %v1319_v24 = vadd.f32 %v1277_v58, %v4944_v53  ;;  %v1692_v32 = vsel %vm841_vm3, %v1680_v59, %v4505_v11 }
 0x259   : > { %v1318_v43 = vadd.f32 %v1291_v42, %v4946_v31  ;;  %v1592_v45 = vadd.f32 %v4947_v36, %v1460_v60  ;;  %v1593_v33 = vadd.f32 %v4948_v6, %v1461_v55  ;;  %v1693_v44 = vsel %vm841_vm3, %v4505_v11, %v1684_v54  ;;  %v3045_v31 = vld [vmem:[#allocation8 + $0x94] ss:$8 sps:$4 sm:$0xff]  }
 0x25a   : > { %v1463_v56 = vadd.f32 %v1434_v28, %v1319_v24  ;;  %v1721_v2 = vadd.f32 %v1692_v32, %v1598_v1  ;;  %v1723_v4 = vadd.f32 %v1684_v54, %v1600_v21  ;;  %v1722_v11 = vadd.f32 %v1693_v44, %v1599_v7  ;;  %v4951_v1 = vld [vmem:[#allocation24_spill] sm:$0xff]  ;;  %v3043_v28 = vld [vmem:[#allocation8 + $0x90] ss:$8 sps:$4 sm:$0xff]   ;;  %2265 = vmatprep.subr.bf16.mxu0 %v3045_v31 }
 0x25b   : > { %v1462_v25 = vadd.f32 %v1433_v16, %v1318_v43  ;;  %v1715_v40 = vadd.f32 %v1688_v50, %v1592_v45  ;;  %v1843_v9 = vpop.permute.xlu0 %1842  ;;  %v1716_v59 = vadd.f32 %v1689_v35, %v1593_v33  ;;  %v4952_v16 = vld [vmem:[#allocation18_spill] sm:$0xff]  ;;  %2570 = vmatprep.subr.bf16.mxu1 %v3045_v31  ;;  %2266 = vmatpush2.bf16.msra.mxu0 %v3043_v28 }
 0x25c   : > { %v1853_v10 = vpop.permute.xlu1 %1852  ;;  %v1595_v51 = vadd.f32 %v4949_v20, %v1463_v56  ;;  %v1864_v13 = vsel %vm1068_vm4, %v4512_v37, %v1843_v9  ;;  %v1865_v39 = vsel %vm1068_vm4, %v1843_v9, %v4522_v46  ;;  %2571 = vmatpush2.bf16.msra.mxu1 %v3043_v28 }
 0x25d   : > { %v1868_v15 = vsel %vm1068_vm4, %v4514_v27, %v1853_v10  ;;  %v1893_v5 = vadd.f32 %v1864_v13, %v1715_v40  ;;  %v1869_v47 = vsel %vm1068_vm4, %v1853_v10, %v4524_v62  ;;  %v1594_v12 = vadd.f32 %v4950_v14, %v1462_v25 }
 0x25e   : > { %v1898_v22 = vadd.f32 %v1868_v15, %v1720_v23  ;;  %v1718_v29 = vadd.f32 %v1676_v3, %v1595_v51  ;;  %v1899_v54 = vadd.f32 %v1869_v47, %v1721_v2  ;;  %v1894_v58 = vadd.f32 %v1865_v39, %v1716_v59  ;;  %v3046_v39 = vld [vmem:[#allocation8 + $0x80] ss:$8 sps:$4 sm:$0xff]  }
 0x25f   : > { %v1944_v17 = vadd.f32 %v1930_v34, %v1893_v5  ;;  %v1847_v18 = vpop.permute.xlu0 %1846  ;;  %v1717_v21 = vadd.f32 %v1690_v48, %v1594_v12 }
 0x260   : > { %v1949_v30 = vadd.f32 %v1930_v34, %v1898_v22  ;;  %v1857_v27 = vpop.permute.xlu1 %1856  ;;  %v1866_v61 = vsel %vm1068_vm4, %v4522_v46, %v1847_v18  ;;  %v1867_v3 = vsel %vm1068_vm4, %v1847_v18, %v4952_v16 }
 0x261   : > { %v1870_v37 = vsel %vm1068_vm4, %v4524_v62, %v1857_v27  ;;  %v1871_v7 = vsel %vm1068_vm4, %v1857_v27, %v4951_v1  ;;  %v1959_v60 = vmax.f32 %v1944_v17, 0.0  ;;  %v1895_v62 = vadd.f32 %v1866_v61, %v1717_v21 }
 0x262   : > { %v1964_v19 = vmax.f32 %v1949_v30, 0.0  ;;  %v1901_v55 = vadd.f32 %v1871_v7, %v1723_v4  ;;  %v1900_v34 = vadd.f32 %v1870_v37, %v1722_v11  ;;  %v1896_v53 = vadd.f32 %v1867_v3, %v1718_v29  ;;  %v3048_v37 = vld [vmem:[#allocation8 + $0x84] ss:$8 sps:$4 sm:$0xff]  }
 0x263   : > { %v1969_v42 = vpack.c.bf16 %v1959_v60, %v1954_v57  ;;  %v1929_v38 = vpop.permute.xlu0 %1928  ;;  %2267 = vmatprep.subr.bf16.mxu0 %v3048_v37  ;;  %2572 = vmatprep.subr.bf16.mxu1 %v3048_v37 }
 0x264   : > { %v1972_v26 = vpack.c.bf16 %v1964_v19, %v1964_v19  ;;  %v1927_v24 = vpop.permute.xlu1 %1926  ;;  %v1942_v43 = vadd.f32 %v1929_v38, %v4484_v8  ;;  %v1952_v36 = vadd.f32 %v1929_v38, %v1901_v55  ;;  %v1947_v20 = vadd.f32 %v1929_v38, %v1896_v53  ;;  %2268 = vmatpush2.bf16.msra.mxu0 %v3046_v39 }
 0x265   : > { %v1931_v46 = vsel %vm841_vm3, %v4943_v49, %v1927_v24  ;;  %v1932_v63 = vsel %vm841_vm3, %v1927_v24, %v1929_v38  ;;  %v2033_v33 = vshrl.u32 %v1969_v42, 16  ;;  %v2036_v50 = vshll.u32 %v1969_v42, 16  ;;  %2573 = vmatpush2.bf16.msra.mxu1 %v3046_v39 }
 0x266   : > { %v2041_v45 = vshrl.u32 %v1972_v26, 16  ;;  %v2044_v6 = vshll.u32 %v1972_v26, 16  ;;  %v1940_v35 = vadd.f32 %v1931_v46, %v4461_v41  ;;  %v1945_v32 = vadd.f32 %v1931_v46, %v1894_v58 }
 0x267   : > { %v1950_v56 = vadd.f32 %v1931_v46, %v1899_v54  ;;  %v1941_v23 = vadd.f32 %v1932_v63, %v4482_v52  ;;  %v2035_v25 = vrot.slane %v2033_v33, 3  ;;  %v2038_v10 = vrot.slane %v2036_v50, 4 }
 0x268   : > { %v2043_v44 = vrot.slane %v2041_v45, 3  ;;  %v2046_v49 = vrot.slane %v2044_v6, 4  ;;  %v1955_v8 = vmax.f32 %v1940_v35, 0.0  ;;  %v1960_v40 = vmax.f32 %v1945_v32, 0.0 }
 0x269   : > { %v1965_v9 = vmax.f32 %v1950_v56, 0.0  ;;  %v1946_v48 = vadd.f32 %v1932_v63, %v1895_v62  ;;  %v1951_v51 = vadd.f32 %v1932_v63, %v1900_v34  ;;  %v1956_v15 = vmax.f32 %v1941_v23, 0.0 }
 0x26a   : > { %v1957_v13 = vmax.f32 %v1942_v43, 0.0  ;;  %v1970_v2 = vpack.c.bf16 %v1960_v40, %v1955_v8  ;;  %v1967_v22 = vmax.f32 %v1952_v36, 0.0  ;;  %v1962_v5 = vmax.f32 %v1947_v20, 0.0  ;;  %v4955_v20 = vld [vmem:[#allocation19_spill] sm:$0xff] }
 0x26b   : > { %v1973_v41 = vpack.c.bf16 %v1965_v9, %v1965_v9  ;;  %v1961_v4 = vmax.f32 %v1946_v48, 0.0  ;;  %v1966_v52 = vmax.f32 %v1951_v51, 0.0  ;;  %v2039_v11 = vor.u32 %v2038_v10, %v2035_v25  ;;  %v4954_v9 = vld [vmem:[#allocation23_spill] sm:$0xff] }
 0x26c   : > { %v2047_v47 = vor.u32 %v2046_v49, %v2043_v44  ;;  %v2050_v59 = vshrl.u32 %v1970_v2, 16  ;;  %v2053_v14 = vshll.u32 %v1970_v2, 16  ;;  %v2297_v27 = vpack.c.bf16 %v1962_v5, %v1957_v13 }
 0x26d   : > { %v2058_v12 = vshrl.u32 %v1973_v41, 16  ;;  %v2061_v30 = vshll.u32 %v1973_v41, 16  ;;  %v2296_v17 = vpack.c.bf16 %v1961_v4, %v1956_v15  ;;  %v2298_v29 = vpack.c.bf16 %v1966_v52, %v1966_v52  ;;  %v3052_v15 = vld [vmem:[#allocation9 + $0x20] sm:$0xf]  ;;  %v2585_v41 = vld [vmem:[%s3420_s13 + $0x10] sm:$0xff] }
 0x26e   : > { %v2299_v18 = vpack.c.bf16 %v1967_v22, %v1967_v22  ;;  %v2052_v1 = vrot.slane %v2050_v59, 3  ;;  %v2055_v7 = vrot.slane %v2053_v14, 4  ;;  %v2358_v19 = vshrl.u32 %v2297_v27, 16  ;;  %v3053_v22 = vld [vmem:[#allocation9 + $0x28] sm:$0xf]  ;;  %v2280_v59 = vld [vmem:[%s3420_s13] sm:$0xff] }
 0x26f   : > { %v2060_v21 = vrot.slane %v2058_v12, 3  ;;  %v2063_v61 = vrot.slane %v2061_v30, 4  ;;  %v2361_v57 = vshll.u32 %v2297_v27, 16  ;;  %v2048_v54 = vsel %vm2014_vm5, %v2039_v11, %v2047_v47  ;;  %v2586_v11 = vld [vmem:[%s3420_s13 + $0x18] sm:$0xff] }
 0x270   : > { %v2366_v60 = vshrl.u32 %v2299_v18, 16  ;;  %v2369_v55 = vshll.u32 %v2299_v18, 16  ;;  %v2056_v58 = vor.u32 %v2055_v7, %v2052_v1  ;;  %v2341_v16 = vshrl.u32 %v2296_v17, 16  ;;  %2068 = vrot.lane.b32.xlu1 %v2048_v54, %s3243_s21  ;;  %v2281_v18 = vld [vmem:[%s3420_s13 + $0x8] sm:$0xff] }
 0x271   : > { %v2064_v34 = vor.u32 %v2063_v61, %v2060_v21  ;;  %v2344_v42 = vshll.u32 %v2296_v17, 16  ;;  %v2349_v62 = vshrl.u32 %v2298_v29, 16  ;;  %v2352_v38 = vshll.u32 %v2298_v29, 16  ;;  %v2587_v17 = vld [vmem:[%s3420_s13 + $0x30] sm:$0xff] }
 0x272   : > { %v2368_v3 = vrot.slane %v2366_v60, 3  ;;  %v2371_v26 = vrot.slane %v2369_v55, 4  ;;  %v2343_v24 = vrot.slane %v2341_v16, 3  ;;  %v2360_v28 = vrot.slane %v2358_v19, 3  ;;  %v2588_v19 = vld [vmem:[%s3420_s13 + $0x38] sm:$0xff]  ;;  %v2282_v55 = vld [vmem:[%s3420_s13 + $0x20] sm:$0xff] }
 0x273   : > { %v2065_v53 = vsel %vm2014_vm5, %v2056_v58, %v2064_v34  ;;  %v2346_v31 = vrot.slane %v2344_v42, 4  ;;  %v2351_v46 = vrot.slane %v2349_v62, 3  ;;  %v2363_v63 = vrot.slane %v2361_v57, 4  ;;  %v2283_v62 = vld [vmem:[%s3420_s13 + $0x28] sm:$0xff] }
 0x274   : > { %2070 = vrot.lane.b32.xlu0 %v2065_v53, %s3243_s21  ;;  %v2372_v43 = vor.u32 %v2371_v26, %v2368_v3  ;;  %v2354_v36 = vrot.slane %v2352_v38, 4 }
 0x275   : > { %v2347_v45 = vor.u32 %v2346_v31, %v2343_v24  ;;  %v2364_v6 = vor.u32 %v2363_v63, %v2360_v28 }
 0x276   : > { %v2355_v33 = vor.u32 %v2354_v36, %v2351_v46 }
 0x277   : > { %v2373_v50 = vsel %vm2014_vm5, %v2364_v6, %v2372_v43 }
 0x278   : > { %v2356_v35 = vsel %vm2014_vm5, %v2347_v45, %v2355_v33  ;;  %2376 = vrot.lane.b32.xlu0 %v2373_v50, %s3243_s21 }
 0x279   : > { %2374 = vrot.lane.b32.xlu1 %v2356_v35, %s3243_s21 }
 0x27d   : > { %2066 = vrot.lane.b32.xlu1 %v4535_v0, %s3243_s21  ;;  %v4953_v0 = vld [vmem:[#allocation17_spill] sm:$0xff] }
 0x27e   : > { %v2335_v48 = vrot.slane %v4954_v9, %v4953_v0  ;;  %v2339_v51 = vrot.slane %v4955_v20, %v4953_v0  ;;  %v2009_v13 = vrot.slane %v3052_v15, %v4953_v0  ;;  %v2013_v5 = vrot.slane %v3053_v22, %v4953_v0 }
 0x2e2   : > { %v2069_v32 = vpop.permute.xlu1 %2068 }
 0x2e6   : > { %v2071_v56 = vpop.permute.xlu0 %2070 }
 0x2e7   : > { %v2074_v23 = vsel %vm999_vm0, %v2069_v32, %v2071_v56 }
 0x2e8   : > { %2269 = vmatprep.mubr.bf16.mxu0 %v2074_v23 }
 0x2ea   : > { %v2377_v44 = vpop.permute.xlu0 %2376 }
 0x2eb   : > { %v2375_v49 = vpop.permute.xlu1 %2374 }
 0x2ec   : > { %v2379_v25 = vsel %vm999_vm0, %v2375_v49, %v2377_v44  ;;  %v2378_v10 = vsel %vm999_vm0, %v2071_v56, %v2375_v49 }
 0x2ed   : > { %2574 = vmatprep.mubr.bf16.mxu1 %v2379_v25 }
 0x2ee   : > { %2575 = vmatmul.mubr.bf16.vlgmr.msra.gmra.mxu1 %v2378_v10 }
 0x2ef   : > { %v2067_v8 = vpop.permute.xlu1 %2066 }
 0x2f0   : > { %v2073_v40 = vsel %vm999_vm0, %v2067_v8, %v2069_v32 }
 0x2f1   : > { %2270 = vmatmul.mubr.bf16.vlgmr.msra.gmra.mxu0 %v2073_v40 }
 0x3ae   : > { %v2576_v2 = vpop.f32.mrf.mxu1 }
 0x3af   : > { %v2577_v4 = vadd.f32 %v2576_v2, %v2335_v48 }
 0x3b0   : > { %v2578_v52 = vpop.f32.mrf.mxu1 }
 0x3b1   : > { %v2271_v47 = vpop.f32.mrf.mxu0  ;;  %v2589_v14 = vadd.f32 %v2585_v41, %v2577_v4  ;;  %v2579_v12 = vadd.f32 %v2578_v52, %v2339_v51 }
 0x3b2   : > { %v2272_v30 = vadd.f32 %v2271_v47, %v2009_v13  ;;  %v2580_v39 = vpop.f32.mrf.mxu1 }
 0x3b3   : > { %v2593_v27 = vmax.f32 %v2589_v14, 0.0  ;;  %v2273_v29 = vpop.f32.mrf.mxu0  ;;  %v2590_v37 = vadd.f32 %v2586_v11, %v2579_v12  ;;  %v2581_v1 = vadd.f32 %v2580_v39, %v2335_v48 }
 0x3b4   : > { %v2284_v7 = vadd.f32 %v2280_v59, %v2272_v30  ;;  %v2274_v21 = vadd.f32 %v2273_v29, %v2013_v5  ;;  %v2582_v61 = vpop.f32.mrf.mxu1 }
 0x3b5   : > { %2597 = vst [vmem:[%s4643_s20 + $0x10] sm:$0xff] %v2593_v27  ;;  %v2594_v57 = vmax.f32 %v2590_v37, 0.0  ;;  %v2275_v60 = vpop.f32.mrf.mxu0  ;;  %v2591_v54 = vadd.f32 %v2587_v17, %v2581_v1  ;;  %v2583_v58 = vadd.f32 %v2582_v61, %v2339_v51 }
 0x3b6   : > { %v2288_v34 = vmax.f32 %v2284_v7, 0.0  ;;  %v2285_v16 = vadd.f32 %v2281_v18, %v2274_v21  ;;  %v2276_v3 = vadd.f32 %v2275_v60, %v2009_v13 }
 0x3b7   : > { %2598 = vst [vmem:[%s4643_s20 + $0x18] sm:$0xff] %v2594_v57  ;;  %v2595_v26 = vmax.f32 %v2591_v54, 0.0  ;;  %v2277_v42 = vpop.f32.mrf.mxu0  ;;  %v2592_v53 = vadd.f32 %v2588_v19, %v2583_v58 }
 0x3b8   : > { %2292 = vst [vmem:[%s4643_s20] sm:$0xff] %v2288_v34  ;;  %v2289_v24 = vmax.f32 %v2285_v16, 0.0  ;;  %v2286_v38 = vadd.f32 %v2282_v55, %v2276_v3  ;;  %v2278_v28 = vadd.f32 %v2277_v42, %v2013_v5 }
 0x3b9   : > { %2599 = vst [vmem:[%s4643_s20 + $0x30] sm:$0xff] %v2595_v26  ;;  %v2596_v31 = vmax.f32 %v2592_v53, 0.0 }
 0x3ba   : > { %2293 = vst [vmem:[%s4643_s20 + $0x8] sm:$0xff] %v2289_v24  ;;  %v2290_v46 = vmax.f32 %v2286_v38, 0.0  ;;  %v2287_v63 = vadd.f32 %v2283_v62, %v2278_v28 }
 0x3bb   : > { %2600 = vst [vmem:[%s4643_s20 + $0x38] sm:$0xff] %v2596_v31 }
 0x3bc   : > { %2294 = vst [vmem:[%s4643_s20 + $0x20] sm:$0xff] %v2290_v46  ;;  %v2291_v43 = vmax.f32 %v2287_v63, 0.0 }
 0x3be   : > { %2295 = vst [vmem:[%s4643_s20 + $0x28] sm:$0xff] %v2291_v43 }
 0x3bf   : > { %3173 = shalt.err (!%p3170_p9)
}
 0x3c0   : > { %s3174_s29 = scalar_lea.hbm %s4661_s8, 1024  ;;  %s3178_s23 = scalar_lea.hbm %s4710_s4, 2048 }
 0x3c1   : > { %p3175_p1 = scmp.ne.s32.totalorder %s4661_s8, %s3174_s29  ;;  %p3179_p11 = scmp.lt.s32.totalorder %s4661_s8, %s4710_s4 }
 0x3c2   : > { %p3180_p13 = scmp.lt.s32.totalorder %s3178_s23, %s3174_s29 }
 0x3c3   : > { %p3176_p8 = pnand %p3175_p1, %p4956_p6 }
 0x3c4   : > { %p3181_p2 = por %p3180_p13, %p3179_p11 }
 0x3c5   : > { %p3177_p10 = pneg %p3176_p8 }
 0x3c7   : > { %p3182_p4 = pnand %p3181_p2, %p3177_p10 }
 0x3c9   : > { %3185 = shalt.err (!%p3182_p4)
}
 0x3ca   : > { %s3247_s12 = smov 512  }
 0x3cb   : > { %2881 = dma.vmem_to_hbm [thread:$0]  (%p4956_p6), %s4654_s10, 1024, %s4661_s8, %s2602_s6, %s3247_s12, %s3247_s12, %s3243_s21  }
 0x3cc PF: > { %s2630_s24 = sand.u32 1, %s3220_s15   ;;  %p4957_p12 = scmp.ne.s32.totalorder %s4780_s22, 0 }
 0x3cd   : > { %p4958_p0 = scmp.ge.s32.totalorder %s3232_s18, 2  ;;  %s2631_s30 = scalar_lea.sflag [#allocation5], %s2630_s24 }
 0x3cf   : > { %p2898_p5 = pnand %p4958_p0, %p4957_p12 }
 0x3d1   : > { %p2899_p3 = pneg %p2898_p5 }
 0x3d3   : > { %3215 = dma.done.wait (%p2899_p3), %s2631_s30, 1024  }
 0x3d4   : > { %3217 = vsyncadd (%p2899_p3), %s2631_s30, 4294966272  ;;  %p19_p7 = scmp.ge.s32.totalorder %s3356_s27, 4   ;;  %s4959_s15 = smov %s3224_s16 }
 0x3d5   : > { %s4960_s16 = smov %s3228_s17  ;;  %s4961_s17 = smov %s3366_s5 }
 0x3d6   : > { %s4962_s18 = smov %s3356_s27  ;;  %21 = sbr.rel (!%p19_p7) target bundleno = 7 (0x7), region = 93 }
 0x3db   :  { %2636 = vsyncpa [#allocation4], 1 }
 0x3dc   :  { %2638 = vsyncpa [#allocation4 + $0x1], 1 }
 0x3dd   :  { %2639 = vsyncpa [#allocation7], 1 }
 0x3de   :  { %2640 = vsyncpa [#allocation10], 1 }
 0x3df   :  { %2641 = vsyncpa [#allocation5], 1 }
 0x3e0   :  { %2643 = vsyncpa [#allocation5 + $0x1], 1 }

</bundles_post_ra>
